<compile_context>
chip_gen: v7x
topology: tpu7x:2x2x1
jax: 0.10.0
libtpu: 0.0.40
codegen_flags: <defaults>
</compile_context>

<pallas_src>
import jax
import jax.numpy as jnp
import numpy as np
from jax.experimental import pallas as pl
from jax.experimental.pallas import tpu as pltpu

# ---- hyperparameters (small, consistent with the module's __init__) ----
INPUT_DIM = 4
MODEL_DIM = 32
NUM_HEADS = 4
NUM_LAYERS = 2
DIM_FF = 64
HEAD_DIM = MODEL_DIM // NUM_HEADS
SEQ = 8
BATCH = 2
ROWS = SEQ * BATCH          # token rows processed jointly (seq-major: r = s*B + b)
EPS = 1e-5                  # nn.LayerNorm default

# ---- single packed-weight slab layout (static row offsets, 128 lanes) ----
W_LANES = 128
# global header (8 rows)
HDR_WIN = 0                 # input projection weight, rows 0:4, lanes 0:32
HDR_BIN = 4                 # input projection bias, 1 row, lanes 0:32
HDR_WOUT = 5                # output projection weight (transposed), 1 row, lanes 0:32
HDR_BOUT = 6                # output projection bias, lane 0
HDR_ROWS = 8
# per-layer block (relative offsets, all lanes start at 0)
WQ_OFF = 0                  # 32 rows, lanes 0:32 (pre-scaled by 1/sqrt(HEAD_DIM))
WK_OFF = 32                 # 32 rows
WV_OFF = 64                 # 32 rows
OW_OFF = 96                 # attn out-proj weight, 32 rows
L2W_OFF = 128               # FFN linear2 weight, 64 rows
L1W_OFF = 192               # FFN linear1 weight, 32 rows, lanes 0:64
BQ_OFF = 224                # 1 row each below
BK_OFF = 225
BV_OFF = 226
OB_OFF = 227
L1B_OFF = 228               # lanes 0:64
L2B_OFF = 229
N1W_OFF = 230
N1B_OFF = 231
N2W_OFF = 232
N2B_OFF = 233
LSTRIDE = 240               # padded to a multiple of 8 rows (sublane aligned)
W_ROWS = HDR_ROWS + NUM_LAYERS * LSTRIDE   # 488


def _layer_norm(x, w, b):
    mean = jnp.mean(x, axis=-1, keepdims=True)
    var = jnp.mean((x - mean) ** 2, axis=-1, keepdims=True)
    return (x - mean) * jax.lax.rsqrt(var + EPS) * w + b


def transformer_kernel(x_ref, w_ref, o_ref):
    f32 = jnp.float32
    x = x_ref[...]                                              # (ROWS, INPUT_DIM), seq-major rows

    # input projection
    win = w_ref[HDR_WIN:HDR_WIN + INPUT_DIM, 0:MODEL_DIM]       # (4, 32)
    bin_ = w_ref[HDR_BIN:HDR_BIN + 1, 0:MODEL_DIM]              # (1, 32)
    h = jnp.dot(x, win, preferred_element_type=f32) + bin_      # (ROWS, 32)

    # constant additive cross-batch mask bias (row r belongs to batch r % BATCH,
    # seq-major layout); computed ONCE before the layer loop.
    rb = jax.lax.broadcasted_iota(jnp.int32, (ROWS, ROWS), 0) % BATCH
    cb = jax.lax.broadcasted_iota(jnp.int32, (ROWS, ROWS), 1) % BATCH
    mask_bias = jnp.where(rb == cb, 0.0, -1e30).astype(f32)     # (ROWS, ROWS)

    # per-head lane masks (1, MODEL_DIM): ones on lanes hd*8:(hd+1)*8, hoisted
    lane = jax.lax.broadcasted_iota(jnp.int32, (1, MODEL_DIM), 1)
    head_masks = [((lane >= hd * HEAD_DIM) & (lane < (hd + 1) * HEAD_DIM)).astype(f32)
                  for hd in range(NUM_HEADS)]

    for l in range(NUM_LAYERS):                                 # static unrolled layer loop
        base = HDR_ROWS + l * LSTRIDE

        # ---- multi-head self-attention (three lane-0-aligned projections) ----
        wq = w_ref[base + WQ_OFF:base + WQ_OFF + MODEL_DIM, 0:MODEL_DIM]
        wk = w_ref[base + WK_OFF:base + WK_OFF + MODEL_DIM, 0:MODEL_DIM]
        wv = w_ref[base + WV_OFF:base + WV_OFF + MODEL_DIM, 0:MODEL_DIM]
        bq = w_ref[base + BQ_OFF:base + BQ_OFF + 1, 0:MODEL_DIM]
        bk = w_ref[base + BK_OFF:base + BK_OFF + 1, 0:MODEL_DIM]
        bv = w_ref[base + BV_OFF:base + BV_OFF + 1, 0:MODEL_DIM]
        q = jnp.dot(h, wq, preferred_element_type=f32) + bq     # already scaled by 1/sqrt(Dh)
        k = jnp.dot(h, wk, preferred_element_type=f32) + bk
        v = jnp.dot(h, wv, preferred_element_type=f32) + bv

        ctx_all = jnp.zeros((ROWS, MODEL_DIM), f32)             # disjoint head lanes accumulate here
        for hd in range(NUM_HEADS):                             # static head loop, no lane slices
            m_h = head_masks[hd]
            # (Q*mask_h) @ K^T over all 32 lanes == q_h @ k_h^T (zeros elsewhere)
            s = jax.lax.dot_general(q * m_h, k, (((1,), (1,)), ((), ())),
                                    preferred_element_type=f32) + mask_bias
            mx = jnp.max(s, axis=-1, keepdims=True)
            e = jnp.exp(s - mx)
            denom = jnp.sum(e, axis=-1, keepdims=True)
            ctx_unn = jnp.dot(e, v * m_h, preferred_element_type=f32)   # nonzero only on head lanes
            ctx_all = ctx_all + ctx_unn * pl.reciprocal(denom, approx=True)

        # single output projection per layer with the full (32, 32) ow
        ow = w_ref[base + OW_OFF:base + OW_OFF + MODEL_DIM, 0:MODEL_DIM]
        ob = w_ref[base + OB_OFF:base + OB_OFF + 1, 0:MODEL_DIM]
        attn = jnp.dot(ctx_all, ow, preferred_element_type=f32) + ob

        n1w = w_ref[base + N1W_OFF:base + N1W_OFF + 1, 0:MODEL_DIM]
        n1b = w_ref[base + N1B_OFF:base + N1B_OFF + 1, 0:MODEL_DIM]
        h = _layer_norm(h + attn, n1w, n1b)                     # post-norm residual 1

        # ---- feed-forward (ReLU) ----
        l1w = w_ref[base + L1W_OFF:base + L1W_OFF + MODEL_DIM, 0:DIM_FF]   # (32, 64)
        l1b = w_ref[base + L1B_OFF:base + L1B_OFF + 1, 0:DIM_FF]
        ff = jnp.maximum(jnp.dot(h, l1w, preferred_element_type=f32) + l1b, 0.0)
        l2w = w_ref[base + L2W_OFF:base + L2W_OFF + DIM_FF, 0:MODEL_DIM]   # (64, 32)
        l2b = w_ref[base + L2B_OFF:base + L2B_OFF + 1, 0:MODEL_DIM]
        ff = jnp.dot(ff, l2w, preferred_element_type=f32) + l2b
        n2w = w_ref[base + N2W_OFF:base + N2W_OFF + 1, 0:MODEL_DIM]
        n2b = w_ref[base + N2B_OFF:base + N2B_OFF + 1, 0:MODEL_DIM]
        h = _layer_norm(h + ff, n2w, n2b)                       # post-norm residual 2

    # output projection, written lane-dense: (1, ROWS) = wout_row @ h^T + bout
    wout_row = w_ref[HDR_WOUT:HDR_WOUT + 1, 0:MODEL_DIM]        # (1, 32)
    bout = w_ref[HDR_BOUT:HDR_BOUT + 1, 0:1]                    # (1, 1)
    o_ref[...] = jax.lax.dot_general(wout_row, h, (((1,), (1,)), ((), ())),
                                     preferred_element_type=f32) + bout


def _forward(x_sbd, wpack):
    """x_sbd: (S, B, INPUT_DIM) seq-first (PyTorch default). Returns (S, B, 1)."""
    S, B, _ = x_sbd.shape
    rows = S * B
    x2 = x_sbd.reshape(rows, INPUT_DIM)        # contiguous reshape, no transpose (free under jit)
    out = pl.pallas_call(
        transformer_kernel,
        out_shape=jax.ShapeDtypeStruct((1, rows), jnp.float32),
        grid_spec=pltpu.PrefetchScalarGridSpec(
            num_scalar_prefetch=0,
            grid=(1,),                          # single step: whole batch in one kernel invocation
            in_specs=[
                pl.BlockSpec((rows, INPUT_DIM), lambda i: (0, 0)),
                pl.BlockSpec((W_ROWS, W_LANES), lambda i: (0, 0)),
            ],
            out_specs=pl.BlockSpec((1, rows), lambda i: (0, 0)),
        ),
        compiler_params=pltpu.CompilerParams(dimension_semantics=("arbitrary",)),
        cost_estimate=pl.CostEstimate(flops=820_000, transcendentals=2_240,
                                      bytes_accessed=260_000),
    )(x2, wpack)
    return out.reshape(S, B, 1)                 # contiguous reshape back to seq-first


transformer_diffusion_forward = jax.jit(_forward)


def init_params(key):
    """Deterministic synthetic parameters. Linear weights stored pre-transposed (in, out)."""
    ks = jax.random.split(key, 20)
    s = 0.05
    return {
        "win": s * jax.random.normal(ks[0], (INPUT_DIM, MODEL_DIM), jnp.float32),
        "bin": s * jax.random.normal(ks[1], (1, MODEL_DIM), jnp.float32),
        "ipw": s * jax.random.normal(ks[2], (NUM_LAYERS, MODEL_DIM, 3 * MODEL_DIM), jnp.float32),
        "ipb": s * jax.random.normal(ks[3], (NUM_LAYERS, 1, 3 * MODEL_DIM), jnp.float32),
        "ow":  s * jax.random.normal(ks[4], (NUM_LAYERS, MODEL_DIM, MODEL_DIM), jnp.float32),
        "ob":  s * jax.random.normal(ks[5], (NUM_LAYERS, 1, MODEL_DIM), jnp.float32),
        "l1w": s * jax.random.normal(ks[6], (NUM_LAYERS, MODEL_DIM, DIM_FF), jnp.float32),
        "l1b": s * jax.random.normal(ks[7], (NUM_LAYERS, 1, DIM_FF), jnp.float32),
        "l2w": s * jax.random.normal(ks[8], (NUM_LAYERS, DIM_FF, MODEL_DIM), jnp.float32),
        "l2b": s * jax.random.normal(ks[9], (NUM_LAYERS, 1, MODEL_DIM), jnp.float32),
        "n1w": jnp.ones((NUM_LAYERS, 1, MODEL_DIM), jnp.float32),
        "n1b": jnp.zeros((NUM_LAYERS, 1, MODEL_DIM), jnp.float32),
        "n2w": jnp.ones((NUM_LAYERS, 1, MODEL_DIM), jnp.float32),
        "n2b": jnp.zeros((NUM_LAYERS, 1, MODEL_DIM), jnp.float32),
        "wout": s * jax.random.normal(ks[10], (MODEL_DIM, 1), jnp.float32),
        "bout": s * jax.random.normal(ks[11], (1, 1), jnp.float32),
    }


def pack_params(p):
    """Pack all weights into ONE lane-padded (W_ROWS, 128) f32 slab with static row offsets.
    The attention scale 1/sqrt(HEAD_DIM) is folded into the Q weights/bias here."""
    w = np.zeros((W_ROWS, W_LANES), np.float32)
    w[HDR_WIN:HDR_WIN + INPUT_DIM, :MODEL_DIM] = np.asarray(p["win"])
    w[HDR_BIN, :MODEL_DIM] = np.asarray(p["bin"])[0]
    w[HDR_WOUT, :MODEL_DIM] = np.asarray(p["wout"])[:, 0]
    w[HDR_BOUT, 0] = float(np.asarray(p["bout"])[0, 0])
    scale = 1.0 / (HEAD_DIM ** 0.5)
    for l in range(NUM_LAYERS):
        base = HDR_ROWS + l * LSTRIDE
        ipw = np.asarray(p["ipw"][l])            # (32, 96) = [Wq | Wk | Wv] (in, out)
        ipb = np.asarray(p["ipb"][l, 0])         # (96,)
        w[base + WQ_OFF:base + WQ_OFF + MODEL_DIM, :MODEL_DIM] = ipw[:, :MODEL_DIM] * scale
        w[base + WK_OFF:base + WK_OFF + MODEL_DIM, :MODEL_DIM] = ipw[:, MODEL_DIM:2 * MODEL_DIM]
        w[base + WV_OFF:base + WV_OFF + MODEL_DIM, :MODEL_DIM] = ipw[:, 2 * MODEL_DIM:]
        w[base + BQ_OFF, :MODEL_DIM] = ipb[:MODEL_DIM] * scale
        w[base + BK_OFF, :MODEL_DIM] = ipb[MODEL_DIM:2 * MODEL_DIM]
        w[base + BV_OFF, :MODEL_DIM] = ipb[2 * MODEL_DIM:]
        w[base + OW_OFF:base + OW_OFF + MODEL_DIM, :MODEL_DIM] = np.asarray(p["ow"][l])
        w[base + OB_OFF, :MODEL_DIM] = np.asarray(p["ob"][l, 0])
        w[base + L1W_OFF:base + L1W_OFF + MODEL_DIM, :DIM_FF] = np.asarray(p["l1w"][l])
        w[base + L1B_OFF, :DIM_FF] = np.asarray(p["l1b"][l, 0])
        w[base + L2W_OFF:base + L2W_OFF + DIM_FF, :MODEL_DIM] = np.asarray(p["l2w"][l])
        w[base + L2B_OFF, :MODEL_DIM] = np.asarray(p["l2b"][l, 0])
        w[base + N1W_OFF, :MODEL_DIM] = np.asarray(p["n1w"][l, 0])
        w[base + N1B_OFF, :MODEL_DIM] = np.asarray(p["n1b"][l, 0])
        w[base + N2W_OFF, :MODEL_DIM] = np.asarray(p["n2w"][l, 0])
        w[base + N2B_OFF, :MODEL_DIM] = np.asarray(p["n2b"][l, 0])
    return jnp.asarray(w)


def reference_forward(x_sbd, p):
    """Pure-JAX reference (eval mode, dropout = identity) for correctness check."""
    def one_seq(x):  # x: (S, INPUT_DIM)
        h = x @ p["win"] + p["bin"]
        scale = 1.0 / (HEAD_DIM ** 0.5)
        for l in range(NUM_LAYERS):
            qkv = h @ p["ipw"][l] + p["ipb"][l]
            q, k, v = qkv[:, :MODEL_DIM], qkv[:, MODEL_DIM:2 * MODEL_DIM], qkv[:, 2 * MODEL_DIM:]
            ctx = []
            for hd in range(NUM_HEADS):
                sl = slice(hd * HEAD_DIM, (hd + 1) * HEAD_DIM)
                s_ = (q[:, sl] @ k[:, sl].T) * scale
                a = jax.nn.softmax(s_, axis=-1)
                ctx.append(a @ v[:, sl])
            ctx = jnp.concatenate(ctx, axis=-1)
            attn_out = ctx @ p["ow"][l] + p["ob"][l]
            h = _layer_norm(h + attn_out, p["n1w"][l], p["n1b"][l])
            ff = jnp.maximum(h @ p["l1w"][l] + p["l1b"][l], 0.0) @ p["l2w"][l] + p["l2b"][l]
            h = _layer_norm(h + ff, p["n2w"][l], p["n2b"][l])
        return h @ p["wout"] + p["bout"]
    x_bsd = jnp.transpose(x_sbd, (1, 0, 2))
    out = jnp.stack([one_seq(x_bsd[b]) for b in range(x_bsd.shape[0])], axis=0)
    return jnp.transpose(out, (1, 0, 2))


if __name__ == "__main__":
    key = jax.random.PRNGKey(0)
    kx, kp = jax.random.split(key)
    # PyTorch default TransformerEncoder layout: (seq, batch, feature)
    x = jax.random.normal(kx, (SEQ, BATCH, INPUT_DIM), jnp.float32)
    params = init_params(kp)
    wpack = pack_params(params)

    out = transformer_diffusion_forward(x, wpack)
    out = jax.block_until_ready(out)
    assert out.shape == (SEQ, BATCH, 1), out.shape

    ref = jax.block_until_ready(reference_forward(x, params))
    assert jnp.allclose(out, ref, rtol=2e-3, atol=2e-3), float(jnp.max(jnp.abs(out - ref)))

    print("KERNEL_OK")
</pallas_src>

<mosaic_0001>
module attributes {stable_mosaic.version = 11 : i64} {
  func.func @transformer_kernel(%arg0: i32, %arg1: memref<16x4xf32, #tpu.memory_space<vmem>>, %arg2: memref<488x128xf32, #tpu.memory_space<vmem>>, %arg3: memref<1x16xf32, #tpu.memory_space<vmem>>) attributes {dimension_semantics = [#tpu.dimension_semantics<arbitrary>], iteration_bounds = array<i64: 1>, scalar_prefetch = 0 : i64, scratch_operands = 0 : i64, tpu.core_type = #tpu.core_type<tc>, window_params = [{pipeline_mode = #tpu.pipeline_mode<synchronous>, transform_indices = @transform_0, window_bounds = array<i64: 16, 4>}, {pipeline_mode = #tpu.pipeline_mode<synchronous>, transform_indices = @transform_1, window_bounds = array<i64: 488, 128>}, {pipeline_mode = #tpu.pipeline_mode<synchronous>, transform_indices = @transform_2, window_bounds = array<i64: 1, 16>}]} {
    %c0 = arith.constant 0 : index
    %c0_0 = arith.constant 0 : index
    %0 = vector.load %arg1[%c0, %c0_0] : memref<16x4xf32, #tpu.memory_space<vmem>>, vector<16x4xf32>
    %c0_1 = arith.constant 0 : index
    %c0_2 = arith.constant 0 : index
    %1 = vector.load %arg2[%c0_1, %c0_2] : memref<488x128xf32, #tpu.memory_space<vmem>>, vector<4x32xf32>
    %c4 = arith.constant 4 : index
    %c0_3 = arith.constant 0 : index
    %2 = vector.load %arg2[%c4, %c0_3] : memref<488x128xf32, #tpu.memory_space<vmem>>, vector<1x32xf32>
    %cst = arith.constant dense<0.000000e+00> : vector<16x32xf32>
    %3 = tpu.matmul %0, %1, %cst {dimension_numbers = #tpu.dot_dimension_numbers<[1], [0], [0], [1], [0, 0, 1, 1], [], []>} : vector<16x4xf32>, vector<4x32xf32>, vector<16x32xf32> -> vector<16x32xf32>
    %4 = vector.broadcast %2 : vector<1x32xf32> to vector<16x32xf32>
    %5 = arith.addf %3, %4 : vector<16x32xf32>
    %6 = tpu.iota {dimensions = array<i32: 0>} : vector<16x16xi32>
    %c2_i32 = arith.constant 2 : i32
    %c0_i32 = arith.constant 0 : i32
    %7 = arith.cmpi eq, %c2_i32, %c0_i32 : i32
    %c1_i32 = arith.constant 1 : i32
    %8 = arith.select %7, %c1_i32, %c2_i32 : i32
    %9 = vector.broadcast %8 : i32 to vector<16x16xi32>
    %10 = arith.remsi %6, %9 : vector<16x16xi32>
    %c0_i32_4 = arith.constant 0 : i32
    %11 = vector.broadcast %c0_i32_4 : i32 to vector<16x16xi32>
    %12 = arith.cmpi ne, %10, %11 : vector<16x16xi32>
    %c0_i32_5 = arith.constant 0 : i32
    %13 = vector.broadcast %c0_i32_5 : i32 to vector<16x16xi32>
    %14 = arith.cmpi slt, %10, %13 : vector<16x16xi32>
    %c0_i32_6 = arith.constant 0 : i32
    %15 = arith.cmpi slt, %8, %c0_i32_6 : i32
    %16 = vector.broadcast %15 : i1 to vector<16x16xi1>
    %17 = vector.broadcast %16 : vector<16x16xi1> to vector<16x16xi1>
    %18 = arith.xori %14, %17 : vector<16x16xi1>
    %19 = arith.andi %18, %12 : vector<16x16xi1>
    %20 = vector.broadcast %8 : i32 to vector<16x16xi32>
    %21 = arith.addi %10, %20 : vector<16x16xi32>
    %22 = arith.select %19, %21, %10 : vector<16x16xi1>, vector<16x16xi32>
    %23 = tpu.iota {dimensions = array<i32: 1>} : vector<16x16xi32>
    %c2_i32_7 = arith.constant 2 : i32
    %c0_i32_8 = arith.constant 0 : i32
    %24 = arith.cmpi eq, %c2_i32_7, %c0_i32_8 : i32
    %c1_i32_9 = arith.constant 1 : i32
    %25 = arith.select %24, %c1_i32_9, %c2_i32_7 : i32
    %26 = vector.broadcast %25 : i32 to vector<16x16xi32>
    %27 = arith.remsi %23, %26 : vector<16x16xi32>
    %c0_i32_10 = arith.constant 0 : i32
    %28 = vector.broadcast %c0_i32_10 : i32 to vector<16x16xi32>
    %29 = arith.cmpi ne, %27, %28 : vector<16x16xi32>
    %c0_i32_11 = arith.constant 0 : i32
    %30 = vector.broadcast %c0_i32_11 : i32 to vector<16x16xi32>
    %31 = arith.cmpi slt, %27, %30 : vector<16x16xi32>
    %c0_i32_12 = arith.constant 0 : i32
    %32 = arith.cmpi slt, %25, %c0_i32_12 : i32
    %33 = vector.broadcast %32 : i1 to vector<16x16xi1>
    %34 = vector.broadcast %33 : vector<16x16xi1> to vector<16x16xi1>
    %35 = arith.xori %31, %34 : vector<16x16xi1>
    %36 = arith.andi %35, %29 : vector<16x16xi1>
    %37 = vector.broadcast %25 : i32 to vector<16x16xi32>
    %38 = arith.addi %27, %37 : vector<16x16xi32>
    %39 = arith.select %36, %38, %27 : vector<16x16xi1>, vector<16x16xi32>
    %40 = arith.cmpi eq, %22, %39 : vector<16x16xi32>
    %cst_13 = arith.constant 0.000000e+00 : f32
    %cst_14 = arith.constant -1.000000e+30 : f32
    %41 = vector.broadcast %cst_13 : f32 to vector<16x16xf32>
    %42 = vector.broadcast %cst_14 : f32 to vector<16x16xf32>
    %43 = arith.select %40, %41, %42 : vector<16x16xi1>, vector<16x16xf32>
    %44 = tpu.iota {dimensions = array<i32: 1>} : vector<1x32xi32>
    %c0_i32_15 = arith.constant 0 : i32
    %45 = vector.broadcast %c0_i32_15 : i32 to vector<1x32xi32>
    %46 = arith.cmpi sge, %44, %45 : vector<1x32xi32>
    %c8_i32 = arith.constant 8 : i32
    %47 = vector.broadcast %c8_i32 : i32 to vector<1x32xi32>
    %48 = arith.cmpi slt, %44, %47 : vector<1x32xi32>
    %49 = arith.andi %46, %48 : vector<1x32xi1>
    %50 = arith.extui %49 : vector<1x32xi1> to vector<1x32xi32>
    %51 = arith.sitofp %50 : vector<1x32xi32> to vector<1x32xf32>
    %c8_i32_16 = arith.constant 8 : i32
    %52 = vector.broadcast %c8_i32_16 : i32 to vector<1x32xi32>
    %53 = arith.cmpi sge, %44, %52 : vector<1x32xi32>
    %c16_i32 = arith.constant 16 : i32
    %54 = vector.broadcast %c16_i32 : i32 to vector<1x32xi32>
    %55 = arith.cmpi slt, %44, %54 : vector<1x32xi32>
    %56 = arith.andi %53, %55 : vector<1x32xi1>
    %57 = arith.extui %56 : vector<1x32xi1> to vector<1x32xi32>
    %58 = arith.sitofp %57 : vector<1x32xi32> to vector<1x32xf32>
    %c16_i32_17 = arith.constant 16 : i32
    %59 = vector.broadcast %c16_i32_17 : i32 to vector<1x32xi32>
    %60 = arith.cmpi sge, %44, %59 : vector<1x32xi32>
    %c24_i32 = arith.constant 24 : i32
    %61 = vector.broadcast %c24_i32 : i32 to vector<1x32xi32>
    %62 = arith.cmpi slt, %44, %61 : vector<1x32xi32>
    %63 = arith.andi %60, %62 : vector<1x32xi1>
    %64 = arith.extui %63 : vector<1x32xi1> to vector<1x32xi32>
    %65 = arith.sitofp %64 : vector<1x32xi32> to vector<1x32xf32>
    %c24_i32_18 = arith.constant 24 : i32
    %66 = vector.broadcast %c24_i32_18 : i32 to vector<1x32xi32>
    %67 = arith.cmpi sge, %44, %66 : vector<1x32xi32>
    %c32_i32 = arith.constant 32 : i32
    %68 = vector.broadcast %c32_i32 : i32 to vector<1x32xi32>
    %69 = arith.cmpi slt, %44, %68 : vector<1x32xi32>
    %70 = arith.andi %67, %69 : vector<1x32xi1>
    %71 = arith.extui %70 : vector<1x32xi1> to vector<1x32xi32>
    %72 = arith.sitofp %71 : vector<1x32xi32> to vector<1x32xf32>
    %c8 = arith.constant 8 : index
    %c0_19 = arith.constant 0 : index
    %73 = vector.load %arg2[%c8, %c0_19] : memref<488x128xf32, #tpu.memory_space<vmem>>, vector<32x32xf32>
    %c40 = arith.constant 40 : index
    %c0_20 = arith.constant 0 : index
    %74 = vector.load %arg2[%c40, %c0_20] : memref<488x128xf32, #tpu.memory_space<vmem>>, vector<32x32xf32>
    %c72 = arith.constant 72 : index
    %c0_21 = arith.constant 0 : index
    %75 = vector.load %arg2[%c72, %c0_21] : memref<488x128xf32, #tpu.memory_space<vmem>>, vector<32x32xf32>
    %c232 = arith.constant 232 : index
    %c0_22 = arith.constant 0 : index
    %76 = vector.load %arg2[%c232, %c0_22] : memref<488x128xf32, #tpu.memory_space<vmem>>, vector<1x32xf32>
    %c233 = arith.constant 233 : index
    %c0_23 = arith.constant 0 : index
    %77 = vector.load %arg2[%c233, %c0_23] : memref<488x128xf32, #tpu.memory_space<vmem>>, vector<1x32xf32>
    %c234 = arith.constant 234 : index
    %c0_24 = arith.constant 0 : index
    %78 = vector.load %arg2[%c234, %c0_24] : memref<488x128xf32, #tpu.memory_space<vmem>>, vector<1x32xf32>
    %cst_25 = arith.constant dense<0.000000e+00> : vector<16x32xf32>
    %79 = tpu.matmul %5, %73, %cst_25 {dimension_numbers = #tpu.dot_dimension_numbers<[1], [0], [0], [1], [0, 0, 1, 1], [], []>} : vector<16x32xf32>, vector<32x32xf32>, vector<16x32xf32> -> vector<16x32xf32>
    %80 = vector.broadcast %76 : vector<1x32xf32> to vector<16x32xf32>
    %81 = arith.addf %79, %80 : vector<16x32xf32>
    %cst_26 = arith.constant dense<0.000000e+00> : vector<16x32xf32>
    %82 = tpu.matmul %5, %74, %cst_26 {dimension_numbers = #tpu.dot_dimension_numbers<[1], [0], [0], [1], [0, 0, 1, 1], [], []>} : vector<16x32xf32>, vector<32x32xf32>, vector<16x32xf32> -> vector<16x32xf32>
    %83 = vector.broadcast %77 : vector<1x32xf32> to vector<16x32xf32>
    %84 = arith.addf %82, %83 : vector<16x32xf32>
    %cst_27 = arith.constant dense<0.000000e+00> : vector<16x32xf32>
    %85 = tpu.matmul %5, %75, %cst_27 {dimension_numbers = #tpu.dot_dimension_numbers<[1], [0], [0], [1], [0, 0, 1, 1], [], []>} : vector<16x32xf32>, vector<32x32xf32>, vector<16x32xf32> -> vector<16x32xf32>
    %86 = vector.broadcast %78 : vector<1x32xf32> to vector<16x32xf32>
    %87 = arith.addf %85, %86 : vector<16x32xf32>
    %cst_28 = arith.constant 0.000000e+00 : f32
    %88 = vector.broadcast %cst_28 : f32 to vector<16x32xf32>
    %89 = vector.broadcast %51 : vector<1x32xf32> to vector<16x32xf32>
    %90 = arith.mulf %81, %89 : vector<16x32xf32>
    %cst_29 = arith.constant dense<0.000000e+00> : vector<16x16xf32>
    %91 = tpu.matmul %90, %84, %cst_29 {dimension_numbers = #tpu.dot_dimension_numbers<[1], [1], [0], [0], [0, 0, 1, 0], [], []>} : vector<16x32xf32>, vector<16x32xf32>, vector<16x16xf32> -> vector<16x16xf32>
    %92 = arith.addf %91, %43 : vector<16x16xf32>
    %cst_30 = arith.constant dense<0xFF800000> : vector<16xf32>
    %93 = vector.multi_reduction <maximumf>, %92, %cst_30 [1] : vector<16x16xf32> to vector<16xf32>
    %94 = vector.shape_cast %93 : vector<16xf32> to vector<16x1xf32>
    %95 = vector.broadcast %94 : vector<16x1xf32> to vector<16x16xf32>
    %96 = arith.subf %92, %95 : vector<16x16xf32>
    %97 = math.exp %96 : vector<16x16xf32>
    %cst_31 = arith.constant dense<0.000000e+00> : vector<16xf32>
    %98 = vector.multi_reduction <add>, %97, %cst_31 [1] : vector<16x16xf32> to vector<16xf32>
    %99 = vector.shape_cast %98 : vector<16xf32> to vector<16x1xf32>
    %100 = vector.broadcast %51 : vector<1x32xf32> to vector<16x32xf32>
    %101 = arith.mulf %87, %100 : vector<16x32xf32>
    %cst_32 = arith.constant dense<0.000000e+00> : vector<16x32xf32>
    %102 = tpu.matmul %97, %101, %cst_32 {dimension_numbers = #tpu.dot_dimension_numbers<[1], [0], [0], [1], [0, 0, 1, 1], [], []>} : vector<16x16xf32>, vector<16x32xf32>, vector<16x32xf32> -> vector<16x32xf32>
    %103 = tpu.reciprocal %99 {approx = true} : vector<16x1xf32> -> vector<16x1xf32>
    %104 = vector.broadcast %103 : vector<16x1xf32> to vector<16x32xf32>
    %105 = arith.mulf %102, %104 : vector<16x32xf32>
    %106 = arith.addf %88, %105 : vector<16x32xf32>
    %107 = vector.broadcast %58 : vector<1x32xf32> to vector<16x32xf32>
    %108 = arith.mulf %81, %107 : vector<16x32xf32>
    %cst_33 = arith.constant dense<0.000000e+00> : vector<16x16xf32>
    %109 = tpu.matmul %108, %84, %cst_33 {dimension_numbers = #tpu.dot_dimension_numbers<[1], [1], [0], [0], [0, 0, 1, 0], [], []>} : vector<16x32xf32>, vector<16x32xf32>, vector<16x16xf32> -> vector<16x16xf32>
    %110 = arith.addf %109, %43 : vector<16x16xf32>
    %cst_34 = arith.constant dense<0xFF800000> : vector<16xf32>
    %111 = vector.multi_reduction <maximumf>, %110, %cst_34 [1] : vector<16x16xf32> to vector<16xf32>
    %112 = vector.shape_cast %111 : vector<16xf32> to vector<16x1xf32>
    %113 = vector.broadcast %112 : vector<16x1xf32> to vector<16x16xf32>
    %114 = arith.subf %110, %113 : vector<16x16xf32>
    %115 = math.exp %114 : vector<16x16xf32>
    %cst_35 = arith.constant dense<0.000000e+00> : vector<16xf32>
    %116 = vector.multi_reduction <add>, %115, %cst_35 [1] : vector<16x16xf32> to vector<16xf32>
    %117 = vector.shape_cast %116 : vector<16xf32> to vector<16x1xf32>
    %118 = vector.broadcast %58 : vector<1x32xf32> to vector<16x32xf32>
    %119 = arith.mulf %87, %118 : vector<16x32xf32>
    %cst_36 = arith.constant dense<0.000000e+00> : vector<16x32xf32>
    %120 = tpu.matmul %115, %119, %cst_36 {dimension_numbers = #tpu.dot_dimension_numbers<[1], [0], [0], [1], [0, 0, 1, 1], [], []>} : vector<16x16xf32>, vector<16x32xf32>, vector<16x32xf32> -> vector<16x32xf32>
    %121 = tpu.reciprocal %117 {approx = true} : vector<16x1xf32> -> vector<16x1xf32>
    %122 = vector.broadcast %121 : vector<16x1xf32> to vector<16x32xf32>
    %123 = arith.mulf %120, %122 : vector<16x32xf32>
    %124 = arith.addf %106, %123 : vector<16x32xf32>
    %125 = vector.broadcast %65 : vector<1x32xf32> to vector<16x32xf32>
    %126 = arith.mulf %81, %125 : vector<16x32xf32>
    %cst_37 = arith.constant dense<0.000000e+00> : vector<16x16xf32>
    %127 = tpu.matmul %126, %84, %cst_37 {dimension_numbers = #tpu.dot_dimension_numbers<[1], [1], [0], [0], [0, 0, 1, 0], [], []>} : vector<16x32xf32>, vector<16x32xf32>, vector<16x16xf32> -> vector<16x16xf32>
    %128 = arith.addf %127, %43 : vector<16x16xf32>
    %cst_38 = arith.constant dense<0xFF800000> : vector<16xf32>
    %129 = vector.multi_reduction <maximumf>, %128, %cst_38 [1] : vector<16x16xf32> to vector<16xf32>
    %130 = vector.shape_cast %129 : vector<16xf32> to vector<16x1xf32>
    %131 = vector.broadcast %130 : vector<16x1xf32> to vector<16x16xf32>
    %132 = arith.subf %128, %131 : vector<16x16xf32>
    %133 = math.exp %132 : vector<16x16xf32>
    %cst_39 = arith.constant dense<0.000000e+00> : vector<16xf32>
    %134 = vector.multi_reduction <add>, %133, %cst_39 [1] : vector<16x16xf32> to vector<16xf32>
    %135 = vector.shape_cast %134 : vector<16xf32> to vector<16x1xf32>
    %136 = vector.broadcast %65 : vector<1x32xf32> to vector<16x32xf32>
    %137 = arith.mulf %87, %136 : vector<16x32xf32>
    %cst_40 = arith.constant dense<0.000000e+00> : vector<16x32xf32>
    %138 = tpu.matmul %133, %137, %cst_40 {dimension_numbers = #tpu.dot_dimension_numbers<[1], [0], [0], [1], [0, 0, 1, 1], [], []>} : vector<16x16xf32>, vector<16x32xf32>, vector<16x32xf32> -> vector<16x32xf32>
    %139 = tpu.reciprocal %135 {approx = true} : vector<16x1xf32> -> vector<16x1xf32>
    %140 = vector.broadcast %139 : vector<16x1xf32> to vector<16x32xf32>
    %141 = arith.mulf %138, %140 : vector<16x32xf32>
    %142 = arith.addf %124, %141 : vector<16x32xf32>
    %143 = vector.broadcast %72 : vector<1x32xf32> to vector<16x32xf32>
    %144 = arith.mulf %81, %143 : vector<16x32xf32>
    %cst_41 = arith.constant dense<0.000000e+00> : vector<16x16xf32>
    %145 = tpu.matmul %144, %84, %cst_41 {dimension_numbers = #tpu.dot_dimension_numbers<[1], [1], [0], [0], [0, 0, 1, 0], [], []>} : vector<16x32xf32>, vector<16x32xf32>, vector<16x16xf32> -> vector<16x16xf32>
    %146 = arith.addf %145, %43 : vector<16x16xf32>
    %cst_42 = arith.constant dense<0xFF800000> : vector<16xf32>
    %147 = vector.multi_reduction <maximumf>, %146, %cst_42 [1] : vector<16x16xf32> to vector<16xf32>
    %148 = vector.shape_cast %147 : vector<16xf32> to vector<16x1xf32>
    %149 = vector.broadcast %148 : vector<16x1xf32> to vector<16x16xf32>
    %150 = arith.subf %146, %149 : vector<16x16xf32>
    %151 = math.exp %150 : vector<16x16xf32>
    %cst_43 = arith.constant dense<0.000000e+00> : vector<16xf32>
    %152 = vector.multi_reduction <add>, %151, %cst_43 [1] : vector<16x16xf32> to vector<16xf32>
    %153 = vector.shape_cast %152 : vector<16xf32> to vector<16x1xf32>
    %154 = vector.broadcast %72 : vector<1x32xf32> to vector<16x32xf32>
    %155 = arith.mulf %87, %154 : vector<16x32xf32>
    %cst_44 = arith.constant dense<0.000000e+00> : vector<16x32xf32>
    %156 = tpu.matmul %151, %155, %cst_44 {dimension_numbers = #tpu.dot_dimension_numbers<[1], [0], [0], [1], [0, 0, 1, 1], [], []>} : vector<16x16xf32>, vector<16x32xf32>, vector<16x32xf32> -> vector<16x32xf32>
    %157 = tpu.reciprocal %153 {approx = true} : vector<16x1xf32> -> vector<16x1xf32>
    %158 = vector.broadcast %157 : vector<16x1xf32> to vector<16x32xf32>
    %159 = arith.mulf %156, %158 : vector<16x32xf32>
    %160 = arith.addf %142, %159 : vector<16x32xf32>
    %c104 = arith.constant 104 : index
    %c0_45 = arith.constant 0 : index
    %161 = vector.load %arg2[%c104, %c0_45] : memref<488x128xf32, #tpu.memory_space<vmem>>, vector<32x32xf32>
    %c235 = arith.constant 235 : index
    %c0_46 = arith.constant 0 : index
    %162 = vector.load %arg2[%c235, %c0_46] : memref<488x128xf32, #tpu.memory_space<vmem>>, vector<1x32xf32>
    %cst_47 = arith.constant dense<0.000000e+00> : vector<16x32xf32>
    %163 = tpu.matmul %160, %161, %cst_47 {dimension_numbers = #tpu.dot_dimension_numbers<[1], [0], [0], [1], [0, 0, 1, 1], [], []>} : vector<16x32xf32>, vector<32x32xf32>, vector<16x32xf32> -> vector<16x32xf32>
    %164 = vector.broadcast %162 : vector<1x32xf32> to vector<16x32xf32>
    %165 = arith.addf %163, %164 : vector<16x32xf32>
    %c238 = arith.constant 238 : index
    %c0_48 = arith.constant 0 : index
    %166 = vector.load %arg2[%c238, %c0_48] : memref<488x128xf32, #tpu.memory_space<vmem>>, vector<1x32xf32>
    %c239 = arith.constant 239 : index
    %c0_49 = arith.constant 0 : index
    %167 = vector.load %arg2[%c239, %c0_49] : memref<488x128xf32, #tpu.memory_space<vmem>>, vector<1x32xf32>
    %168 = arith.addf %5, %165 : vector<16x32xf32>
    %cst_50 = arith.constant dense<0.000000e+00> : vector<16xf32>
    %169 = vector.multi_reduction <add>, %168, %cst_50 [1] : vector<16x32xf32> to vector<16xf32>
    %170 = vector.shape_cast %169 : vector<16xf32> to vector<16x1xf32>
    %cst_51 = arith.constant 3.200000e+01 : f32
    %171 = vector.broadcast %cst_51 : f32 to vector<16x1xf32>
    %172 = arith.divf %170, %171 : vector<16x1xf32>
    %173 = vector.broadcast %172 : vector<16x1xf32> to vector<16x32xf32>
    %174 = arith.subf %168, %173 : vector<16x32xf32>
    %175 = arith.mulf %174, %174 : vector<16x32xf32>
    %cst_52 = arith.constant dense<0.000000e+00> : vector<16xf32>
    %176 = vector.multi_reduction <add>, %175, %cst_52 [1] : vector<16x32xf32> to vector<16xf32>
    %177 = vector.shape_cast %176 : vector<16xf32> to vector<16x1xf32>
    %cst_53 = arith.constant 3.200000e+01 : f32
    %178 = vector.broadcast %cst_53 : f32 to vector<16x1xf32>
    %179 = arith.divf %177, %178 : vector<16x1xf32>
    %180 = vector.broadcast %172 : vector<16x1xf32> to vector<16x32xf32>
    %181 = arith.subf %168, %180 : vector<16x32xf32>
    %cst_54 = arith.constant 9.99999974E-6 : f32
    %182 = vector.broadcast %cst_54 : f32 to vector<16x1xf32>
    %183 = arith.addf %179, %182 : vector<16x1xf32>
    %184 = math.rsqrt %183 : vector<16x1xf32>
    %185 = vector.broadcast %184 : vector<16x1xf32> to vector<16x32xf32>
    %186 = arith.mulf %181, %185 : vector<16x32xf32>
    %187 = vector.broadcast %166 : vector<1x32xf32> to vector<16x32xf32>
    %188 = arith.mulf %186, %187 : vector<16x32xf32>
    %189 = vector.broadcast %167 : vector<1x32xf32> to vector<16x32xf32>
    %190 = arith.addf %188, %189 : vector<16x32xf32>
    %c200 = arith.constant 200 : index
    %c0_55 = arith.constant 0 : index
    %191 = vector.load %arg2[%c200, %c0_55] : memref<488x128xf32, #tpu.memory_space<vmem>>, vector<32x64xf32>
    %c236 = arith.constant 236 : index
    %c0_56 = arith.constant 0 : index
    %192 = vector.load %arg2[%c236, %c0_56] : memref<488x128xf32, #tpu.memory_space<vmem>>, vector<1x64xf32>
    %cst_57 = arith.constant dense<0.000000e+00> : vector<16x64xf32>
    %193 = tpu.matmul %190, %191, %cst_57 {dimension_numbers = #tpu.dot_dimension_numbers<[1], [0], [0], [1], [0, 0, 1, 1], [], []>} : vector<16x32xf32>, vector<32x64xf32>, vector<16x64xf32> -> vector<16x64xf32>
    %194 = vector.broadcast %192 : vector<1x64xf32> to vector<16x64xf32>
    %195 = arith.addf %193, %194 : vector<16x64xf32>
    %cst_58 = arith.constant 0.000000e+00 : f32
    %196 = vector.broadcast %cst_58 : f32 to vector<16x64xf32>
    %197 = arith.maximumf %195, %196 : vector<16x64xf32>
    %c136 = arith.constant 136 : index
    %c0_59 = arith.constant 0 : index
    %198 = vector.load %arg2[%c136, %c0_59] : memref<488x128xf32, #tpu.memory_space<vmem>>, vector<64x32xf32>
    %c237 = arith.constant 237 : index
    %c0_60 = arith.constant 0 : index
    %199 = vector.load %arg2[%c237, %c0_60] : memref<488x128xf32, #tpu.memory_space<vmem>>, vector<1x32xf32>
    %cst_61 = arith.constant dense<0.000000e+00> : vector<16x32xf32>
    %200 = tpu.matmul %197, %198, %cst_61 {dimension_numbers = #tpu.dot_dimension_numbers<[1], [0], [0], [1], [0, 0, 1, 1], [], []>} : vector<16x64xf32>, vector<64x32xf32>, vector<16x32xf32> -> vector<16x32xf32>
    %201 = vector.broadcast %199 : vector<1x32xf32> to vector<16x32xf32>
    %202 = arith.addf %200, %201 : vector<16x32xf32>
    %c240 = arith.constant 240 : index
    %c0_62 = arith.constant 0 : index
    %203 = vector.load %arg2[%c240, %c0_62] : memref<488x128xf32, #tpu.memory_space<vmem>>, vector<1x32xf32>
    %c241 = arith.constant 241 : index
    %c0_63 = arith.constant 0 : index
    %204 = vector.load %arg2[%c241, %c0_63] : memref<488x128xf32, #tpu.memory_space<vmem>>, vector<1x32xf32>
    %205 = arith.addf %190, %202 : vector<16x32xf32>
    %cst_64 = arith.constant dense<0.000000e+00> : vector<16xf32>
    %206 = vector.multi_reduction <add>, %205, %cst_64 [1] : vector<16x32xf32> to vector<16xf32>
    %207 = vector.shape_cast %206 : vector<16xf32> to vector<16x1xf32>
    %cst_65 = arith.constant 3.200000e+01 : f32
    %208 = vector.broadcast %cst_65 : f32 to vector<16x1xf32>
    %209 = arith.divf %207, %208 : vector<16x1xf32>
    %210 = vector.broadcast %209 : vector<16x1xf32> to vector<16x32xf32>
    %211 = arith.subf %205, %210 : vector<16x32xf32>
    %212 = arith.mulf %211, %211 : vector<16x32xf32>
    %cst_66 = arith.constant dense<0.000000e+00> : vector<16xf32>
    %213 = vector.multi_reduction <add>, %212, %cst_66 [1] : vector<16x32xf32> to vector<16xf32>
    %214 = vector.shape_cast %213 : vector<16xf32> to vector<16x1xf32>
    %cst_67 = arith.constant 3.200000e+01 : f32
    %215 = vector.broadcast %cst_67 : f32 to vector<16x1xf32>
    %216 = arith.divf %214, %215 : vector<16x1xf32>
    %217 = vector.broadcast %209 : vector<16x1xf32> to vector<16x32xf32>
    %218 = arith.subf %205, %217 : vector<16x32xf32>
    %cst_68 = arith.constant 9.99999974E-6 : f32
    %219 = vector.broadcast %cst_68 : f32 to vector<16x1xf32>
    %220 = arith.addf %216, %219 : vector<16x1xf32>
    %221 = math.rsqrt %220 : vector<16x1xf32>
    %222 = vector.broadcast %221 : vector<16x1xf32> to vector<16x32xf32>
    %223 = arith.mulf %218, %222 : vector<16x32xf32>
    %224 = vector.broadcast %203 : vector<1x32xf32> to vector<16x32xf32>
    %225 = arith.mulf %223, %224 : vector<16x32xf32>
    %226 = vector.broadcast %204 : vector<1x32xf32> to vector<16x32xf32>
    %227 = arith.addf %225, %226 : vector<16x32xf32>
    %c248 = arith.constant 248 : index
    %c0_69 = arith.constant 0 : index
    %228 = vector.load %arg2[%c248, %c0_69] : memref<488x128xf32, #tpu.memory_space<vmem>>, vector<32x32xf32>
    %c280 = arith.constant 280 : index
    %c0_70 = arith.constant 0 : index
    %229 = vector.load %arg2[%c280, %c0_70] : memref<488x128xf32, #tpu.memory_space<vmem>>, vector<32x32xf32>
    %c312 = arith.constant 312 : index
    %c0_71 = arith.constant 0 : index
    %230 = vector.load %arg2[%c312, %c0_71] : memref<488x128xf32, #tpu.memory_space<vmem>>, vector<32x32xf32>
    %c472 = arith.constant 472 : index
    %c0_72 = arith.constant 0 : index
    %231 = vector.load %arg2[%c472, %c0_72] : memref<488x128xf32, #tpu.memory_space<vmem>>, vector<1x32xf32>
    %c473 = arith.constant 473 : index
    %c0_73 = arith.constant 0 : index
    %232 = vector.load %arg2[%c473, %c0_73] : memref<488x128xf32, #tpu.memory_space<vmem>>, vector<1x32xf32>
    %c474 = arith.constant 474 : index
    %c0_74 = arith.constant 0 : index
    %233 = vector.load %arg2[%c474, %c0_74] : memref<488x128xf32, #tpu.memory_space<vmem>>, vector<1x32xf32>
    %cst_75 = arith.constant dense<0.000000e+00> : vector<16x32xf32>
    %234 = tpu.matmul %227, %228, %cst_75 {dimension_numbers = #tpu.dot_dimension_numbers<[1], [0], [0], [1], [0, 0, 1, 1], [], []>} : vector<16x32xf32>, vector<32x32xf32>, vector<16x32xf32> -> vector<16x32xf32>
    %235 = vector.broadcast %231 : vector<1x32xf32> to vector<16x32xf32>
    %236 = arith.addf %234, %235 : vector<16x32xf32>
    %cst_76 = arith.constant dense<0.000000e+00> : vector<16x32xf32>
    %237 = tpu.matmul %227, %229, %cst_76 {dimension_numbers = #tpu.dot_dimension_numbers<[1], [0], [0], [1], [0, 0, 1, 1], [], []>} : vector<16x32xf32>, vector<32x32xf32>, vector<16x32xf32> -> vector<16x32xf32>
    %238 = vector.broadcast %232 : vector<1x32xf32> to vector<16x32xf32>
    %239 = arith.addf %237, %238 : vector<16x32xf32>
    %cst_77 = arith.constant dense<0.000000e+00> : vector<16x32xf32>
    %240 = tpu.matmul %227, %230, %cst_77 {dimension_numbers = #tpu.dot_dimension_numbers<[1], [0], [0], [1], [0, 0, 1, 1], [], []>} : vector<16x32xf32>, vector<32x32xf32>, vector<16x32xf32> -> vector<16x32xf32>
    %241 = vector.broadcast %233 : vector<1x32xf32> to vector<16x32xf32>
    %242 = arith.addf %240, %241 : vector<16x32xf32>
    %cst_78 = arith.constant 0.000000e+00 : f32
    %243 = vector.broadcast %cst_78 : f32 to vector<16x32xf32>
    %244 = vector.broadcast %51 : vector<1x32xf32> to vector<16x32xf32>
    %245 = arith.mulf %236, %244 : vector<16x32xf32>
    %cst_79 = arith.constant dense<0.000000e+00> : vector<16x16xf32>
    %246 = tpu.matmul %245, %239, %cst_79 {dimension_numbers = #tpu.dot_dimension_numbers<[1], [1], [0], [0], [0, 0, 1, 0], [], []>} : vector<16x32xf32>, vector<16x32xf32>, vector<16x16xf32> -> vector<16x16xf32>
    %247 = arith.addf %246, %43 : vector<16x16xf32>
    %cst_80 = arith.constant dense<0xFF800000> : vector<16xf32>
    %248 = vector.multi_reduction <maximumf>, %247, %cst_80 [1] : vector<16x16xf32> to vector<16xf32>
    %249 = vector.shape_cast %248 : vector<16xf32> to vector<16x1xf32>
    %250 = vector.broadcast %249 : vector<16x1xf32> to vector<16x16xf32>
    %251 = arith.subf %247, %250 : vector<16x16xf32>
    %252 = math.exp %251 : vector<16x16xf32>
    %cst_81 = arith.constant dense<0.000000e+00> : vector<16xf32>
    %253 = vector.multi_reduction <add>, %252, %cst_81 [1] : vector<16x16xf32> to vector<16xf32>
    %254 = vector.shape_cast %253 : vector<16xf32> to vector<16x1xf32>
    %255 = vector.broadcast %51 : vector<1x32xf32> to vector<16x32xf32>
    %256 = arith.mulf %242, %255 : vector<16x32xf32>
    %cst_82 = arith.constant dense<0.000000e+00> : vector<16x32xf32>
    %257 = tpu.matmul %252, %256, %cst_82 {dimension_numbers = #tpu.dot_dimension_numbers<[1], [0], [0], [1], [0, 0, 1, 1], [], []>} : vector<16x16xf32>, vector<16x32xf32>, vector<16x32xf32> -> vector<16x32xf32>
    %258 = tpu.reciprocal %254 {approx = true} : vector<16x1xf32> -> vector<16x1xf32>
    %259 = vector.broadcast %258 : vector<16x1xf32> to vector<16x32xf32>
    %260 = arith.mulf %257, %259 : vector<16x32xf32>
    %261 = arith.addf %243, %260 : vector<16x32xf32>
    %262 = vector.broadcast %58 : vector<1x32xf32> to vector<16x32xf32>
    %263 = arith.mulf %236, %262 : vector<16x32xf32>
    %cst_83 = arith.constant dense<0.000000e+00> : vector<16x16xf32>
    %264 = tpu.matmul %263, %239, %cst_83 {dimension_numbers = #tpu.dot_dimension_numbers<[1], [1], [0], [0], [0, 0, 1, 0], [], []>} : vector<16x32xf32>, vector<16x32xf32>, vector<16x16xf32> -> vector<16x16xf32>
    %265 = arith.addf %264, %43 : vector<16x16xf32>
    %cst_84 = arith.constant dense<0xFF800000> : vector<16xf32>
    %266 = vector.multi_reduction <maximumf>, %265, %cst_84 [1] : vector<16x16xf32> to vector<16xf32>
    %267 = vector.shape_cast %266 : vector<16xf32> to vector<16x1xf32>
    %268 = vector.broadcast %267 : vector<16x1xf32> to vector<16x16xf32>
    %269 = arith.subf %265, %268 : vector<16x16xf32>
    %270 = math.exp %269 : vector<16x16xf32>
    %cst_85 = arith.constant dense<0.000000e+00> : vector<16xf32>
    %271 = vector.multi_reduction <add>, %270, %cst_85 [1] : vector<16x16xf32> to vector<16xf32>
    %272 = vector.shape_cast %271 : vector<16xf32> to vector<16x1xf32>
    %273 = vector.broadcast %58 : vector<1x32xf32> to vector<16x32xf32>
    %274 = arith.mulf %242, %273 : vector<16x32xf32>
    %cst_86 = arith.constant dense<0.000000e+00> : vector<16x32xf32>
    %275 = tpu.matmul %270, %274, %cst_86 {dimension_numbers = #tpu.dot_dimension_numbers<[1], [0], [0], [1], [0, 0, 1, 1], [], []>} : vector<16x16xf32>, vector<16x32xf32>, vector<16x32xf32> -> vector<16x32xf32>
    %276 = tpu.reciprocal %272 {approx = true} : vector<16x1xf32> -> vector<16x1xf32>
    %277 = vector.broadcast %276 : vector<16x1xf32> to vector<16x32xf32>
    %278 = arith.mulf %275, %277 : vector<16x32xf32>
    %279 = arith.addf %261, %278 : vector<16x32xf32>
    %280 = vector.broadcast %65 : vector<1x32xf32> to vector<16x32xf32>
    %281 = arith.mulf %236, %280 : vector<16x32xf32>
    %cst_87 = arith.constant dense<0.000000e+00> : vector<16x16xf32>
    %282 = tpu.matmul %281, %239, %cst_87 {dimension_numbers = #tpu.dot_dimension_numbers<[1], [1], [0], [0], [0, 0, 1, 0], [], []>} : vector<16x32xf32>, vector<16x32xf32>, vector<16x16xf32> -> vector<16x16xf32>
    %283 = arith.addf %282, %43 : vector<16x16xf32>
    %cst_88 = arith.constant dense<0xFF800000> : vector<16xf32>
    %284 = vector.multi_reduction <maximumf>, %283, %cst_88 [1] : vector<16x16xf32> to vector<16xf32>
    %285 = vector.shape_cast %284 : vector<16xf32> to vector<16x1xf32>
    %286 = vector.broadcast %285 : vector<16x1xf32> to vector<16x16xf32>
    %287 = arith.subf %283, %286 : vector<16x16xf32>
    %288 = math.exp %287 : vector<16x16xf32>
    %cst_89 = arith.constant dense<0.000000e+00> : vector<16xf32>
    %289 = vector.multi_reduction <add>, %288, %cst_89 [1] : vector<16x16xf32> to vector<16xf32>
    %290 = vector.shape_cast %289 : vector<16xf32> to vector<16x1xf32>
    %291 = vector.broadcast %65 : vector<1x32xf32> to vector<16x32xf32>
    %292 = arith.mulf %242, %291 : vector<16x32xf32>
    %cst_90 = arith.constant dense<0.000000e+00> : vector<16x32xf32>
    %293 = tpu.matmul %288, %292, %cst_90 {dimension_numbers = #tpu.dot_dimension_numbers<[1], [0], [0], [1], [0, 0, 1, 1], [], []>} : vector<16x16xf32>, vector<16x32xf32>, vector<16x32xf32> -> vector<16x32xf32>
    %294 = tpu.reciprocal %290 {approx = true} : vector<16x1xf32> -> vector<16x1xf32>
    %295 = vector.broadcast %294 : vector<16x1xf32> to vector<16x32xf32>
    %296 = arith.mulf %293, %295 : vector<16x32xf32>
    %297 = arith.addf %279, %296 : vector<16x32xf32>
    %298 = vector.broadcast %72 : vector<1x32xf32> to vector<16x32xf32>
    %299 = arith.mulf %236, %298 : vector<16x32xf32>
    %cst_91 = arith.constant dense<0.000000e+00> : vector<16x16xf32>
    %300 = tpu.matmul %299, %239, %cst_91 {dimension_numbers = #tpu.dot_dimension_numbers<[1], [1], [0], [0], [0, 0, 1, 0], [], []>} : vector<16x32xf32>, vector<16x32xf32>, vector<16x16xf32> -> vector<16x16xf32>
    %301 = arith.addf %300, %43 : vector<16x16xf32>
    %cst_92 = arith.constant dense<0xFF800000> : vector<16xf32>
    %302 = vector.multi_reduction <maximumf>, %301, %cst_92 [1] : vector<16x16xf32> to vector<16xf32>
    %303 = vector.shape_cast %302 : vector<16xf32> to vector<16x1xf32>
    %304 = vector.broadcast %303 : vector<16x1xf32> to vector<16x16xf32>
    %305 = arith.subf %301, %304 : vector<16x16xf32>
    %306 = math.exp %305 : vector<16x16xf32>
    %cst_93 = arith.constant dense<0.000000e+00> : vector<16xf32>
    %307 = vector.multi_reduction <add>, %306, %cst_93 [1] : vector<16x16xf32> to vector<16xf32>
    %308 = vector.shape_cast %307 : vector<16xf32> to vector<16x1xf32>
    %309 = vector.broadcast %72 : vector<1x32xf32> to vector<16x32xf32>
    %310 = arith.mulf %242, %309 : vector<16x32xf32>
    %cst_94 = arith.constant dense<0.000000e+00> : vector<16x32xf32>
    %311 = tpu.matmul %306, %310, %cst_94 {dimension_numbers = #tpu.dot_dimension_numbers<[1], [0], [0], [1], [0, 0, 1, 1], [], []>} : vector<16x16xf32>, vector<16x32xf32>, vector<16x32xf32> -> vector<16x32xf32>
    %312 = tpu.reciprocal %308 {approx = true} : vector<16x1xf32> -> vector<16x1xf32>
    %313 = vector.broadcast %312 : vector<16x1xf32> to vector<16x32xf32>
    %314 = arith.mulf %311, %313 : vector<16x32xf32>
    %315 = arith.addf %297, %314 : vector<16x32xf32>
    %c344 = arith.constant 344 : index
    %c0_95 = arith.constant 0 : index
    %316 = vector.load %arg2[%c344, %c0_95] : memref<488x128xf32, #tpu.memory_space<vmem>>, vector<32x32xf32>
    %c475 = arith.constant 475 : index
    %c0_96 = arith.constant 0 : index
    %317 = vector.load %arg2[%c475, %c0_96] : memref<488x128xf32, #tpu.memory_space<vmem>>, vector<1x32xf32>
    %cst_97 = arith.constant dense<0.000000e+00> : vector<16x32xf32>
    %318 = tpu.matmul %315, %316, %cst_97 {dimension_numbers = #tpu.dot_dimension_numbers<[1], [0], [0], [1], [0, 0, 1, 1], [], []>} : vector<16x32xf32>, vector<32x32xf32>, vector<16x32xf32> -> vector<16x32xf32>
    %319 = vector.broadcast %317 : vector<1x32xf32> to vector<16x32xf32>
    %320 = arith.addf %318, %319 : vector<16x32xf32>
    %c478 = arith.constant 478 : index
    %c0_98 = arith.constant 0 : index
    %321 = vector.load %arg2[%c478, %c0_98] : memref<488x128xf32, #tpu.memory_space<vmem>>, vector<1x32xf32>
    %c479 = arith.constant 479 : index
    %c0_99 = arith.constant 0 : index
    %322 = vector.load %arg2[%c479, %c0_99] : memref<488x128xf32, #tpu.memory_space<vmem>>, vector<1x32xf32>
    %323 = arith.addf %227, %320 : vector<16x32xf32>
    %cst_100 = arith.constant dense<0.000000e+00> : vector<16xf32>
    %324 = vector.multi_reduction <add>, %323, %cst_100 [1] : vector<16x32xf32> to vector<16xf32>
    %325 = vector.shape_cast %324 : vector<16xf32> to vector<16x1xf32>
    %cst_101 = arith.constant 3.200000e+01 : f32
    %326 = vector.broadcast %cst_101 : f32 to vector<16x1xf32>
    %327 = arith.divf %325, %326 : vector<16x1xf32>
    %328 = vector.broadcast %327 : vector<16x1xf32> to vector<16x32xf32>
    %329 = arith.subf %323, %328 : vector<16x32xf32>
    %330 = arith.mulf %329, %329 : vector<16x32xf32>
    %cst_102 = arith.constant dense<0.000000e+00> : vector<16xf32>
    %331 = vector.multi_reduction <add>, %330, %cst_102 [1] : vector<16x32xf32> to vector<16xf32>
    %332 = vector.shape_cast %331 : vector<16xf32> to vector<16x1xf32>
    %cst_103 = arith.constant 3.200000e+01 : f32
    %333 = vector.broadcast %cst_103 : f32 to vector<16x1xf32>
    %334 = arith.divf %332, %333 : vector<16x1xf32>
    %335 = vector.broadcast %327 : vector<16x1xf32> to vector<16x32xf32>
    %336 = arith.subf %323, %335 : vector<16x32xf32>
    %cst_104 = arith.constant 9.99999974E-6 : f32
    %337 = vector.broadcast %cst_104 : f32 to vector<16x1xf32>
    %338 = arith.addf %334, %337 : vector<16x1xf32>
    %339 = math.rsqrt %338 : vector<16x1xf32>
    %340 = vector.broadcast %339 : vector<16x1xf32> to vector<16x32xf32>
    %341 = arith.mulf %336, %340 : vector<16x32xf32>
    %342 = vector.broadcast %321 : vector<1x32xf32> to vector<16x32xf32>
    %343 = arith.mulf %341, %342 : vector<16x32xf32>
    %344 = vector.broadcast %322 : vector<1x32xf32> to vector<16x32xf32>
    %345 = arith.addf %343, %344 : vector<16x32xf32>
    %c440 = arith.constant 440 : index
    %c0_105 = arith.constant 0 : index
    %346 = vector.load %arg2[%c440, %c0_105] : memref<488x128xf32, #tpu.memory_space<vmem>>, vector<32x64xf32>
    %c476 = arith.constant 476 : index
    %c0_106 = arith.constant 0 : index
    %347 = vector.load %arg2[%c476, %c0_106] : memref<488x128xf32, #tpu.memory_space<vmem>>, vector<1x64xf32>
    %cst_107 = arith.constant dense<0.000000e+00> : vector<16x64xf32>
    %348 = tpu.matmul %345, %346, %cst_107 {dimension_numbers = #tpu.dot_dimension_numbers<[1], [0], [0], [1], [0, 0, 1, 1], [], []>} : vector<16x32xf32>, vector<32x64xf32>, vector<16x64xf32> -> vector<16x64xf32>
    %349 = vector.broadcast %347 : vector<1x64xf32> to vector<16x64xf32>
    %350 = arith.addf %348, %349 : vector<16x64xf32>
    %cst_108 = arith.constant 0.000000e+00 : f32
    %351 = vector.broadcast %cst_108 : f32 to vector<16x64xf32>
    %352 = arith.maximumf %350, %351 : vector<16x64xf32>
    %c376 = arith.constant 376 : index
    %c0_109 = arith.constant 0 : index
    %353 = vector.load %arg2[%c376, %c0_109] : memref<488x128xf32, #tpu.memory_space<vmem>>, vector<64x32xf32>
    %c477 = arith.constant 477 : index
    %c0_110 = arith.constant 0 : index
    %354 = vector.load %arg2[%c477, %c0_110] : memref<488x128xf32, #tpu.memory_space<vmem>>, vector<1x32xf32>
    %cst_111 = arith.constant dense<0.000000e+00> : vector<16x32xf32>
    %355 = tpu.matmul %352, %353, %cst_111 {dimension_numbers = #tpu.dot_dimension_numbers<[1], [0], [0], [1], [0, 0, 1, 1], [], []>} : vector<16x64xf32>, vector<64x32xf32>, vector<16x32xf32> -> vector<16x32xf32>
    %356 = vector.broadcast %354 : vector<1x32xf32> to vector<16x32xf32>
    %357 = arith.addf %355, %356 : vector<16x32xf32>
    %c480 = arith.constant 480 : index
    %c0_112 = arith.constant 0 : index
    %358 = vector.load %arg2[%c480, %c0_112] : memref<488x128xf32, #tpu.memory_space<vmem>>, vector<1x32xf32>
    %c481 = arith.constant 481 : index
    %c0_113 = arith.constant 0 : index
    %359 = vector.load %arg2[%c481, %c0_113] : memref<488x128xf32, #tpu.memory_space<vmem>>, vector<1x32xf32>
    %360 = arith.addf %345, %357 : vector<16x32xf32>
    %cst_114 = arith.constant dense<0.000000e+00> : vector<16xf32>
    %361 = vector.multi_reduction <add>, %360, %cst_114 [1] : vector<16x32xf32> to vector<16xf32>
    %362 = vector.shape_cast %361 : vector<16xf32> to vector<16x1xf32>
    %cst_115 = arith.constant 3.200000e+01 : f32
    %363 = vector.broadcast %cst_115 : f32 to vector<16x1xf32>
    %364 = arith.divf %362, %363 : vector<16x1xf32>
    %365 = vector.broadcast %364 : vector<16x1xf32> to vector<16x32xf32>
    %366 = arith.subf %360, %365 : vector<16x32xf32>
    %367 = arith.mulf %366, %366 : vector<16x32xf32>
    %cst_116 = arith.constant dense<0.000000e+00> : vector<16xf32>
    %368 = vector.multi_reduction <add>, %367, %cst_116 [1] : vector<16x32xf32> to vector<16xf32>
    %369 = vector.shape_cast %368 : vector<16xf32> to vector<16x1xf32>
    %cst_117 = arith.constant 3.200000e+01 : f32
    %370 = vector.broadcast %cst_117 : f32 to vector<16x1xf32>
    %371 = arith.divf %369, %370 : vector<16x1xf32>
    %372 = vector.broadcast %364 : vector<16x1xf32> to vector<16x32xf32>
    %373 = arith.subf %360, %372 : vector<16x32xf32>
    %cst_118 = arith.constant 9.99999974E-6 : f32
    %374 = vector.broadcast %cst_118 : f32 to vector<16x1xf32>
    %375 = arith.addf %371, %374 : vector<16x1xf32>
    %376 = math.rsqrt %375 : vector<16x1xf32>
    %377 = vector.broadcast %376 : vector<16x1xf32> to vector<16x32xf32>
    %378 = arith.mulf %373, %377 : vector<16x32xf32>
    %379 = vector.broadcast %358 : vector<1x32xf32> to vector<16x32xf32>
    %380 = arith.mulf %378, %379 : vector<16x32xf32>
    %381 = vector.broadcast %359 : vector<1x32xf32> to vector<16x32xf32>
    %382 = arith.addf %380, %381 : vector<16x32xf32>
    %c5 = arith.constant 5 : index
    %c0_119 = arith.constant 0 : index
    %383 = vector.load %arg2[%c5, %c0_119] : memref<488x128xf32, #tpu.memory_space<vmem>>, vector<1x32xf32>
    %c6 = arith.constant 6 : index
    %c0_120 = arith.constant 0 : index
    %384 = vector.load %arg2[%c6, %c0_120] : memref<488x128xf32, #tpu.memory_space<vmem>>, vector<1x1xf32>
    %cst_121 = arith.constant dense<0.000000e+00> : vector<1x16xf32>
    %385 = tpu.matmul %383, %382, %cst_121 {dimension_numbers = #tpu.dot_dimension_numbers<[1], [1], [0], [0], [0, 0, 1, 0], [], []>} : vector<1x32xf32>, vector<16x32xf32>, vector<1x16xf32> -> vector<1x16xf32>
    %386 = vector.broadcast %384 : vector<1x1xf32> to vector<1x16xf32>
    %387 = arith.addf %385, %386 : vector<1x16xf32>
    %c0_122 = arith.constant 0 : index
    %c0_123 = arith.constant 0 : index
    %388 = vector.load %arg3[%c0_122, %c0_123] : memref<1x16xf32, #tpu.memory_space<vmem>>, vector<1x16xf32>
    tpu.vector_store %arg3[%c0_122, %c0_123], %387 {strides = array<i32>} : memref<1x16xf32, #tpu.memory_space<vmem>>, vector<1x16xf32>,
    return
  }
  func.func @transform_0(%arg0: i32) -> (i32, i32) {
    %c0_i32 = arith.constant 0 : i32
    %c0_i32_0 = arith.constant 0 : i32
    %c0_i32_1 = arith.constant 0 : i32
    return %c0_i32, %c0_i32_0 : i32, i32
  }
  func.func @transform_1(%arg0: i32) -> (i32, i32) {
    %c0_i32 = arith.constant 0 : i32
    %c0_i32_0 = arith.constant 0 : i32
    %c0_i32_1 = arith.constant 0 : i32
    return %c0_i32, %c0_i32_0 : i32, i32
  }
  func.func @transform_2(%arg0: i32) -> (i32, i32) {
    %c0_i32 = arith.constant 0 : i32
    %c0_i32_0 = arith.constant 0 : i32
    %c0_i32_1 = arith.constant 0 : i32
    return %c0_i32, %c0_i32_0 : i32, i32
  }
}

</mosaic_0001>

<bundles_post_ra>
// kernel: _forward.1
= control target key start
LH: loop header
LB: loop body
LE: loop exit
PB: predicated region body
PF: predicated region fallthrough
CT: control target
= control target key end

     0   :  { %7 = vsyncpa [#allocation3], 0  ;;  %s3883_s9 = smov [#allocation2]   ;;  %s4255_s0 = inlined_call_operand.vmem [shape: f32[16,4], index: 0, kind: input, shape index: {}]   ;;  %s4256_s1 = inlined_call_operand.hbm [shape: f32[488,128], index: 1, kind: input, shape index: {}]   ;;  %s4257_s2 = inlined_call_operand.vmem [shape: f32[1,16], index: 2, kind: output, shape index: {}]  }
   0x1   :  { %s15_s10 = sshll.u32 %s3883_s9, 4  ;;  %s3859_s13 = scalar_lea.hbm %s4256_s1, 7808  ;;  %s16_s10 = int_to_ptr.vmem [resolvable:$true] %s15_s10 }
   0x2   :  { %p3860_p0 = scmp.ne.s32.totalorder %s4256_s1, %s3859_s13  ;;  %p3863_p1 = scmp.lt.u32.totalorder %s3859_s13, %s4256_s1 }
   0x4   :  { %p3865_p2 = pnand %p3863_p1, %p3860_p0 }
   0x6   :  { %3868 = shalt.err (!%p3865_p2)
}
   0x7   :  { %s3869_s18 = scalar_lea.vmem %s16_s10, 7808  ;;  %p3874_p4 = scmp.lt.s32.totalorder %s16_s10, %s16_s10 }
   0x8   :  { %p3870_p3 = scmp.ne.s32.totalorder %s16_s10, %s3869_s18  ;;  %p3875_p5 = scmp.lt.s32.totalorder %s3869_s18, %s3869_s18 }
   0xa   :  { %p3876_p6 = por %p3875_p5, %p3874_p4 }
   0xc   :  { %p3877_p7 = pnand %p3876_p6, %p3870_p3 }
   0xe   :  { %3880 = shalt.err (!%p3877_p7)
}
   0xf   :  { %s3884_s19 = smov 128   ;;  %s3885_s20 = smov 8  }
  0x10   :  { %21 = dma.hbm_to_vmem [thread:$0]  %s4256_s1, 7808, %s16_s10, [#allocation3], %s3884_s19, %s3884_s19, %s3885_s20  }
  0x11   :  { %3881 = dma.done.wait [#allocation3], 7808  }
  0x12   :  { %3882 = vsyncadd [#allocation3], 4294959488  ;;  %vm40_vm0 = vcmask 1043456   ;;  %vm33_vm1 = vcmask 31744   ;;  %v27_v0 = vld [vmem:[#allocation2] sm:$0xf]  ;;  %v119_v26 = vlaneseq }
  0x13   :  { %v25_v1 = vld [vmem:[%s4255_s0] sm:$0xff]  ;;  %v26_v2 = vld [vmem:[%s4255_s0 + $0x8] sm:$0xff]  ;;  %3302 = vmatprep.subr.msk.mxu0 %vm40_vm0, %v27_v0  ;;  %v185_v4 = vld [vmem:[#allocation2 + $0x10] sm:$0xff]  ;;  %vm203_vm2 = vcmask 261120   ;;  %v3886_v32 = vmov 0.0  }
  0x14   :  { %3304 = vmatprep.mubr.msk.f32.mxu0 %vm33_vm1, %v25_v1  ;;  %v184_v3 = vld [vmem:[#allocation2 + $0x8] sm:$0xff]  ;;  %3303 = vmatpush3.msk.msra.mxu0 %vm40_vm0, %v27_v0  ;;  %v189_v7 = vld [vmem:[#allocation2 + $0x30] sm:$0xff]  ;;  %v186_v9 = vld [vmem:[#allocation2 + $0x18] sm:$0xff]  ;;  %v3940_v27 = vand.u32 127, %v119_v26  ;;  %v120_v0 = vshrl.u32 %v119_v26, 7  ;;  %vm532_vm0 = vcmask 130048  }
  0x15   :  { %v188_v5 = vld [vmem:[#allocation2 + $0x28] sm:$0xff]  ;;  %v3574_v6 = vpack.c.bf16 %v185_v4, %v184_v3  ;;  %3305 = vmatmul.mubr.msk.f32.vlgmr.msra.gmra.mrb[0].mxu0 %vm33_vm1, %v26_v2  ;;  %v187_v10 = vld [vmem:[#allocation2 + $0x20] sm:$0xff]  ;;  %v190_v12 = vld [vmem:[#allocation2 + $0x38] sm:$0xff]  ;;  %vm1448_vm1 = vcmask 523264  }
  0x16   :  { %v3582_v8 = vpack.c.bf16 %v189_v7, %v188_v5  ;;  %v3578_v11 = vpack.c.bf16 %v187_v10, %v186_v9  ;;  %v191_v13 = vld [vmem:[#allocation2 + $0x40] sm:$0xff]  ;;  %v192_v15 = vld [vmem:[#allocation2 + $0x48] sm:$0xff]  ;;  %v193_v16 = vld [vmem:[#allocation2 + $0x50] sm:$0xff]  ;;  %vm165_vm3 = vcmp.lt.s32.totalorder %v3940_v27, 8  ;;  %vm169_vm4 = vcmp.ge.s32.totalorder %v3940_v27, 8 }
  0x17   :  { %3575 = vmatprep.subr.bf16.mxu1 %v3574_v6  ;;  %v3586_v14 = vpack.c.bf16 %v191_v13, %v190_v12  ;;  %v3590_v17 = vpack.c.bf16 %v193_v16, %v192_v15  ;;  %v3049_v18 = vld [vmem:[#allocation2 + $0x4] ss:$0 sm:$0xff]  ;;  %v194_v20 = vld [vmem:[#allocation2 + $0x58] sm:$0xff]  ;;  %v3060_v28 = vld [vmem:[#allocation2 + $0xe9] ss:$0 sm:$0xff]  ;;  %v3944_v33 = vsel %vm165_vm3, 1.0, %v3886_v32 }
  0x18   :  { %3577 = vmatpush3.bf16.msra.mxu1 %v3574_v6  ;;  %3583 = vmatprep.subr.bf16.mxu0 %v3582_v8  ;;  %v195_v21 = vld [vmem:[#allocation2 + $0x60] sm:$0xff]  ;;  %v3057_v29 = vld [vmem:[#allocation2 + $0xe8] ss:$0 sm:$0xff]  ;;  %vm170_vm5 = vcmp.lt.s32.totalorder %v3940_v27, 16  ;;  %vm174_vm6 = vcmp.ge.s32.totalorder %v3940_v27, 16  ;;  %vm175_vm7 = vcmp.lt.s32.totalorder %v3940_v27, 24  ;;  %vm3954_vm8 = vmpackc.low %vm203_vm2, %vm203_vm2 }
  0x19   :  { %3585 = vmatpush3.bf16.msra.mxu0 %v3582_v8  ;;  %3579 = vmatprep.subr.bf16.mxu1 %v3578_v11  ;;  %v3594_v25 = vpack.c.bf16 %v195_v21, %v194_v20  ;;  %vm179_vm9 = vcmp.ge.s32.totalorder %v3940_v27, 24  ;;  %vm180_vm10 = vcmp.lt.s32.totalorder %v3940_v27, 32  ;;  %vm171_vm11 = vmand %vm169_vm4, %vm170_vm5  ;;  %v3063_v43 = vld [vmem:[#allocation2 + $0xea] ss:$0 sm:$0xff]  ;;  %v121_v1 = vadd.s32 8, %v120_v0 }
  0x1a   :  { %3587 = vmatprep.subr.bf16.mxu0 %v3586_v14  ;;  %vm176_vm12 = vmand %vm174_vm6, %vm175_vm7  ;;  %v3974_v45 = vsel %vm171_vm11, 1.0, %v3886_v32  ;;  %v152_v2 = vand.u32 1, %v3940_v27  ;;  %v126_v3 = vand.u32 1, %v120_v0  ;;  %v3887_v5 = vmov -1e+30  }
  0x1b   :  { %vm181_vm13 = vmand %vm179_vm9, %vm180_vm10  ;;  %v3977_v48 = vsel %vm176_vm12, 1.0, %v3886_v32  ;;  %v133_v4 = vand.u32 1, %v121_v1  ;;  %vm3889_vm3 = vmmov 0   ;;  %vm3042_vm4 = vcmask 122880  }
  0x1c   :  { %3581 = vmatpush3.bf16.msra.mxu1 %v3578_v11  ;;  %v3980_v49 = vsel %vm181_vm13, 1.0, %v3886_v32  ;;  %vm160_vm14 = vcmp.eq.s32.totalorder %v126_v3, %v152_v2 }
  0x1d   :  { %3589 = vmatpush3.bf16.msra.mxu0 %v3586_v14  ;;  %3591 = vmatprep.subr.bf16.mxu1 %v3590_v17  ;;  %vm161_vm15 = vcmp.eq.s32.totalorder %v133_v4, %v152_v2  ;;  %v4002_v6 = vsel %vm160_vm14, 0.0, %v3887_v5 }
  0x1e   :  { %v4004_v8 = vsel %vm161_vm15, 0.0, %v3887_v5 }
  0xe8   :  { %v3306_v19 = vpop.f32.mrb[0].mxu0 }
  0xe9   :  { %v110_v22 = vpop.f32.mrb[1].mxu0  ;;  %v3926_v24 = vadd.f32 %v3306_v19, %v3049_v18 }
  0xea   :  { %v3924_v23 = vadd.f32 %v3049_v18, %v110_v22 }
  0xec   :  { %3315 = vmatprep.mubr.msk.f32.mxu1 %vm203_vm2, %v3924_v23  ;;  %3326 = vmatprep.mubr.msk.f32.mxu0 %vm203_vm2, %v3924_v23 }
  0xed   :  { %3316 = vmatmul.mubr.msk.f32.vlgmr.msra.gmra.mrb[0].mxu1 %vm203_vm2, %v3926_v24  ;;  %3327 = vmatmul.mubr.msk.f32.vlgmr.msra.gmra.mrb[2].mxu0 %vm203_vm2, %v3926_v24 }
  0xee   :  { %3593 = vmatpush3.bf16.msra.mxu1 %v3590_v17  ;;  %3337 = vmatprep.mubr.msk.f32.mxu1 %vm203_vm2, %v3924_v23 }
  0xef   :  { %3595 = vmatprep.subr.bf16.mxu1 %v3594_v25 }
  0xf2   :  { %3597 = vmatpush3.bf16.msra.mxu1 %v3594_v25 }
  0xf5   :  { %3338 = vmatmul.mubr.msk.f32.vlgmr.msra.gmra.mrb[2].mxu1 %vm203_vm2, %v3926_v24 }
 0x1c0   :  { %v3317_v30 = vpop.f32.mrb[0].mxu1  ;;  %v3328_v31 = vpop.f32.mrb[2].mxu0 }
 0x1c1   :  { %v361_v34 = vadd.f32 %v3328_v31, %v3060_v28  ;;  %v276_v35 = vpop.f32.mrb[1].mxu1  ;;  %v355_v36 = vpop.f32.mrb[3].mxu0  ;;  %v3964_v42 = vadd.f32 %v3317_v30, %v3057_v29 }
 0x1c2   :  { %v3948_v37 = vadd.f32 %v3057_v29, %v276_v35  ;;  %v356_v38 = vadd.f32 %v3060_v28, %v355_v36 }
 0x1c3   :  { %v444_v50 = vmul.f32 %v3944_v33, %v3964_v42  ;;  %v641_v25 = vmul.f32 %v3974_v45, %v3964_v42 }
 0x1c4   :  { %v3960_v40 = vpack.c.bf16 %v361_v34, %v356_v38  ;;  %v443_v41 = vmul.f32 %v3944_v33, %v3948_v37  ;;  %v640_v22 = vmul.f32 %v3974_v45, %v3948_v37  ;;  %v1020_v5 = vmul.f32 %v3980_v49, %v3948_v37 }
 0x1c6   :  { %3600 = vmatprep.subr.msk.bf16.mxu0 %vm3954_vm8, %v3960_v40  ;;  %3344 = vmatprep.mubr.msk.f32.mxu0 %vm203_vm2, %v443_v41 }
 0x1c7   :  { %3603 = vmatpush3.bf16.xpose.msk.msra.mxu0 %vm3954_vm8, %v3960_v40 }
 0x1c8   :  { %v3339_v44 = vpop.f32.mrb[2].mxu1 }
 0x1c9   :  { %v440_v46 = vadd.f32 %v3339_v44, %v3063_v43  ;;  %v434_v47 = vpop.f32.mrb[3].mxu1 }
 0x1ca   :  { %v435_v51 = vadd.f32 %v3063_v43, %v434_v47 }
 0x1cb   :  { %v552_v52 = vmul.f32 %v3944_v33, %v440_v46  ;;  %v742_v53 = vmul.f32 %v3974_v45, %v440_v46  ;;  %v932_v54 = vmul.f32 %v3977_v48, %v440_v46  ;;  %v1122_v55 = vmul.f32 %v3980_v49, %v440_v46 }
 0x1cc   :  { %v551_v56 = vmul.f32 %v3944_v33, %v435_v51  ;;  %v741_v57 = vmul.f32 %v3974_v45, %v435_v51  ;;  %v931_v58 = vmul.f32 %v3977_v48, %v435_v51  ;;  %v1121_v59 = vmul.f32 %v3980_v49, %v435_v51 }
 0x1cd   :  { %v830_v51 = vmul.f32 %v3977_v48, %v3948_v37 }
 0x1ce   :  { %3345 = vmatmul.mubr.msk.f32.vlgmr.msra.gmra.mrb[4].mxu0 %vm203_vm2, %v444_v50  ;;  %v3604_v60 = vpack.c.bf16 %v552_v52, %v551_v56  ;;  %v3614_v61 = vpack.c.bf16 %v742_v53, %v741_v57  ;;  %v3624_v62 = vpack.c.bf16 %v932_v54, %v931_v58  ;;  %v3993_v63 = vpack.c.bf16 %v1122_v55, %v1121_v59 }
 0x1cf   :  { %v831_v52 = vmul.f32 %v3977_v48, %v3964_v42 }
 0x1d0   :  { %3605 = vmatprep.subr.bf16.mxu0 %v3604_v60  ;;  %3615 = vmatprep.subr.bf16.mxu1 %v3614_v61 }
 0x1d1   :  { %3607 = vmatpush3.bf16.msra.mxu0 %v3604_v60  ;;  %3617 = vmatpush3.bf16.msra.mxu1 %v3614_v61 }
 0x1d2   :  { %3610 = vmatprep.subr.msk.bf16.mxu0 %vm3954_vm8, %v3960_v40  ;;  %3620 = vmatprep.subr.msk.bf16.mxu1 %vm3954_vm8, %v3960_v40 }
 0x2a1   :  { %v3346_v7 = vpop.f32.mrb[4].mxu0 }
 0x2a2   :  { %v523_v9 = vpop.f32.mrb[5].mxu0  ;;  %v529_v11 = vadd.f32 %v3346_v7, %v4004_v8  ;;  %v1021_v7 = vmul.f32 %v3980_v49, %v3964_v42 }
 0x2a3   :  { %v524_v10 = vadd.f32 %v523_v9, %v4002_v6 }
 0x2a4   :  { %v536_v13 = vsel %vm532_vm0, %v529_v11, -inf }
 0x2a5   :  { %v533_v12 = vsel %vm532_vm0, %v524_v10, -inf }
 0x2a6   :  { %534 = vmax.xlane.f32.xlu0 %v533_v12 }
 0x2aa   :  { %537 = vmax.xlane.f32.xlu0 %v536_v13 }
 0x333   :  { %v535_v14 = vpop.xlane.xlu0 %534 }
 0x334   :  { %v539_v15 = vsub.f32 %v524_v10, %v535_v14 }
 0x336   :  { %v541_v16 = vmul.f32 1.442695, %v539_v15 }
 0x337   :  { %v538_v17 = vpop.xlane.xlu0 %537 }
 0x338   :  { %3779 = vpow2.f32 %v541_v16  ;;  %v540_v18 = vsub.f32 %v529_v11, %v538_v17 }
 0x33a   :  { %v543_v19 = vmul.f32 1.442695, %v540_v18 }
 0x33c   :  { %3781 = vpow2.f32 %v543_v19 }
 0x342   :  { %v4010_v20 = vpop.eup %3779 }
 0x343   :  { %3351 = vmatprep.mubr.msk.f32.mxu0 %vm532_vm0, %v4010_v20  ;;  %v545_v42 = vsel %vm532_vm0, %v4010_v20, 0.0 }
 0x346   :  { %v4014_v21 = vpop.eup %3781 }
 0x347   :  { %3352 = vmatmul.mubr.msk.f32.vlgmr.msra.gmra.mrb[6].mxu0 %vm532_vm0, %v4014_v21  ;;  %v548_v17 = vsel %vm532_vm0, %v4014_v21, 0.0 }
 0x348   :  { %3613 = vmatpush3.bf16.xpose.msk.msra.mxu0 %vm3954_vm8, %v3960_v40  ;;  %3358 = vmatprep.mubr.msk.f32.mxu0 %vm203_vm2, %v640_v22 }
 0x349   :  { %3625 = vmatprep.subr.bf16.mxu0 %v3624_v62 }
 0x34f   :  { %3359 = vmatmul.mubr.msk.f32.vlgmr.msra.gmra.mrb[8].mxu0 %vm203_vm2, %v641_v25 }
 0x350   :  { %3627 = vmatpush3.bf16.msra.mxu0 %v3624_v62 }
 0x351   :  { %3630 = vmatprep.subr.msk.bf16.mxu0 %vm3954_vm8, %v3960_v40 }
 0x41a   :  { %v4030_v26 = vpop.f32.mrb[6].mxu0 }
 0x41b   :  { %v4032_v27 = vpop.f32.mrb[7].mxu0 }
 0x422   :  { %v3360_v28 = vpop.f32.mrb[8].mxu0 }
 0x423   :  { %v714_v29 = vpop.f32.mrb[9].mxu0  ;;  %v720_v31 = vadd.f32 %v3360_v28, %v4004_v8 }
 0x424   :  { %v715_v30 = vadd.f32 %v714_v29, %v4002_v6 }
 0x425   :  { %v726_v35 = vsel %vm532_vm0, %v720_v31, -inf }
 0x426   :  { %v723_v34 = vsel %vm532_vm0, %v715_v30, -inf }
 0x427   :  { %724 = vmax.xlane.f32.xlu1 %v723_v34 }
 0x42b   :  { %727 = vmax.xlane.f32.xlu1 %v726_v35 }
 0x4b4   :  { %v725_v36 = vpop.xlane.xlu1 %724 }
 0x4b5   :  { %v729_v38 = vsub.f32 %v715_v30, %v725_v36 }
 0x4b7   :  { %v731_v41 = vmul.f32 1.442695, %v729_v38 }
 0x4b8   :  { %v728_v43 = vpop.xlane.xlu1 %727 }
 0x4b9   :  { %3783 = vpow2.f32 %v731_v41  ;;  %v730_v44 = vsub.f32 %v720_v31, %v728_v43 }
 0x4bb   :  { %v733_v46 = vmul.f32 1.442695, %v730_v44 }
 0x4bd   :  { %3785 = vpow2.f32 %v733_v46 }
 0x4c3   :  { %v3784_v47 = vpop.eup %3783 }
 0x4c4   :  { %3365 = vmatprep.mubr.msk.f32.mxu1 %vm532_vm0, %v3784_v47  ;;  %v735_v15 = vsel %vm532_vm0, %v3784_v47, 0.0 }
 0x4c7   :  { %v3786_v50 = vpop.eup %3785 }
 0x4c8   :  { %3366 = vmatmul.mubr.msk.f32.vlgmr.msra.gmra.mrb[4].mxu1 %vm532_vm0, %v3786_v50  ;;  %v738_v16 = vsel %vm532_vm0, %v3786_v50, 0.0 }
 0x4c9   :  { %3623 = vmatpush3.bf16.xpose.msk.msra.mxu1 %vm3954_vm8, %v3960_v40  ;;  %3372 = vmatprep.mubr.msk.f32.mxu1 %vm203_vm2, %v830_v51 }
 0x4ca   :  { %3635 = vmatprep.subr.bf16.mxu1 %v3993_v63 }
 0x4d0   :  { %3373 = vmatmul.mubr.msk.f32.vlgmr.msra.gmra.mrb[6].mxu1 %vm203_vm2, %v831_v52 }
 0x4d1   :  { %3637 = vmatpush3.bf16.msra.mxu1 %v3993_v63 }
 0x59b   :  { %v4051_v53 = vpop.f32.mrb[4].mxu1 }
 0x59c   :  { %v4053_v54 = vpop.f32.mrb[5].mxu1 }
 0x5a3   :  { %v3374_v55 = vpop.f32.mrb[6].mxu1 }
 0x5a4   :  { %v910_v56 = vadd.f32 %v3374_v55, %v4004_v8  ;;  %v904_v57 = vpop.f32.mrb[7].mxu1 }
 0x5a5   :  { %v905_v58 = vadd.f32 %v904_v57, %v4002_v6 }
 0x5a6   :  { %v916_v59 = vsel %vm532_vm0, %v910_v56, -inf }
 0x5a7   :  { %917 = vmax.xlane.f32.xlu1 %v916_v59  ;;  %v913_v60 = vsel %vm532_vm0, %v905_v58, -inf }
 0x5a8   :  { %914 = vmax.xlane.f32.xlu0 %v913_v60 }
 0x634   :  { %v918_v61 = vpop.xlane.xlu1 %917 }
 0x635   :  { %v920_v62 = vsub.f32 %v910_v56, %v918_v61  ;;  %v915_v0 = vpop.xlane.xlu0 %914 }
 0x636   :  { %v919_v63 = vsub.f32 %v905_v58, %v915_v0 }
 0x637   :  { %v923_v1 = vmul.f32 1.442695, %v920_v62 }
 0x638   :  { %v921_v2 = vmul.f32 1.442695, %v919_v63 }
 0x63a   :  { %3787 = vpow2.f32 %v921_v2 }
 0x63b   :  { %3789 = vpow2.f32 %v923_v1 }
 0x644   :  { %v3788_v3 = vpop.eup %3787 }
 0x645   :  { %v3790_v4 = vpop.eup %3789  ;;  %3379 = vmatprep.mubr.msk.f32.mxu0 %vm532_vm0, %v3788_v3  ;;  %v925_v19 = vsel %vm532_vm0, %v3788_v3, 0.0  ;;  %v1210_v3 = vld [vmem:[#allocation2 + $0x68] sm:$0xff] }
 0x646   :  { %3380 = vmatmul.mubr.msk.f32.vlgmr.msra.gmra.mrb[10].mxu0 %vm532_vm0, %v3790_v4  ;;  %v928_v18 = vsel %vm532_vm0, %v3790_v4, 0.0  ;;  %v1211_v4 = vld [vmem:[#allocation2 + $0x70] sm:$0xff] }
 0x647   :  { %3633 = vmatpush3.bf16.xpose.msk.msra.mxu0 %vm3954_vm8, %v3960_v40  ;;  %3386 = vmatprep.mubr.msk.f32.mxu0 %vm203_vm2, %v1020_v5  ;;  %v3638_v5 = vpack.c.bf16 %v1211_v4, %v1210_v3  ;;  %v3093_v4 = vld [vmem:[#allocation2 + $0xee] ss:$0 sm:$0xff] }
 0x649   :  { %3639 = vmatprep.subr.bf16.mxu1 %v3638_v5 }
 0x64e   :  { %3387 = vmatmul.mubr.msk.f32.vlgmr.msra.gmra.mrb[12].mxu0 %vm203_vm2, %v1021_v7 }
 0x719   :  { %v3381_v9 = vpop.f32.mrb[10].mxu0 }
 0x71a   :  { %v1005_v10 = vpop.f32.mrb[11].mxu0 }
 0x721   :  { %v3388_v11 = vpop.f32.mrb[12].mxu0 }
 0x722   :  { %v1100_v12 = vadd.f32 %v3388_v11, %v4004_v8  ;;  %v1094_v13 = vpop.f32.mrb[13].mxu0 }
 0x723   :  { %v1095_v37 = vadd.f32 %v1094_v13, %v4002_v6 }
 0x724   :  { %v1106_v14 = vsel %vm532_vm0, %v1100_v12, -inf }
 0x725   :  { %1107 = vmax.xlane.f32.xlu1 %v1106_v14  ;;  %v1103_v40 = vsel %vm532_vm0, %v1095_v37, -inf }
 0x726   :  { %1104 = vmax.xlane.f32.xlu0 %v1103_v40 }
 0x729   :  { %736 = vadd.xlane.f32.xlu1 %v735_v15  ;;  %v3090_v15 = vld [vmem:[#allocation2 + $0xeb] ss:$0 sm:$0xff] }
 0x72a   :  { %546 = vadd.xlane.f32.xlu0 %v545_v42 }
 0x72d   :  { %739 = vadd.xlane.f32.xlu1 %v738_v16 }
 0x72e   :  { %549 = vadd.xlane.f32.xlu0 %v548_v17 }
 0x731   :  { %929 = vadd.xlane.f32.xlu1 %v928_v18 }
 0x732   :  { %926 = vadd.xlane.f32.xlu0 %v925_v19 }
 0x7b2   :  { %v1108_v22 = vpop.xlane.xlu1 %1107 }
 0x7b3   :  { %v1110_v25 = vsub.f32 %v1100_v12, %v1108_v22  ;;  %v1105_v28 = vpop.xlane.xlu0 %1104 }
 0x7b4   :  { %v1109_v29 = vsub.f32 %v1095_v37, %v1105_v28 }
 0x7b5   :  { %v1113_v30 = vmul.f32 1.442695, %v1110_v25 }
 0x7b6   :  { %v1111_v20 = vmul.f32 1.442695, %v1109_v29  ;;  %v737_v31 = vpop.xlane.xlu1 %736 }
 0x7b7   :  { %3791 = vpow2.f32 %v1113_v30  ;;  %v547_v34 = vpop.xlane.xlu0 %546 }
 0x7b8   :  { %3793 = vpow2.f32 %v1111_v20 }
 0x7b9   :  { %3795 = vrcp.f32 %v737_v31 }
 0x7ba   :  { %3797 = vrcp.f32 %v547_v34  ;;  %v740_v21 = vpop.xlane.xlu1 %739 }
 0x7bb   :  { %3799 = vrcp.f32 %v740_v21  ;;  %v550_v35 = vpop.xlane.xlu0 %549 }
 0x7bc   :  { %3801 = vrcp.f32 %v550_v35 }
 0x7be   :  { %v930_v36 = vpop.xlane.xlu1 %929 }
 0x7bf   :  { %3803 = vrcp.f32 %v930_v36  ;;  %v927_v38 = vpop.xlane.xlu0 %926 }
 0x7c0   :  { %3805 = vrcp.f32 %v927_v38 }
 0x7c1   :  { %v3792_v41 = vpop.eup %3791 }
 0x7c2   :  { %v3794_v43 = vpop.eup %3793  ;;  %v1118_v44 = vsel %vm532_vm0, %v3792_v41, 0.0 }
 0x7c3   :  { %v3796_v46 = vpop.eup %3795  ;;  %3393 = vmatprep.mubr.msk.f32.mxu1 %vm532_vm0, %v3794_v43  ;;  %1119 = vadd.xlane.f32.xlu1 %v1118_v44  ;;  %v1115_v47 = vsel %vm532_vm0, %v3794_v43, 0.0  ;;  %v1345_v44 = vld [vmem:[#allocation2 + $0xd8] sm:$0xff] }
 0x7c4   :  { %v3798_v50 = vpop.eup %3797  ;;  %3394 = vmatmul.mubr.msk.f32.vlgmr.msra.gmra.mrb[8].mxu1 %vm532_vm0, %v3792_v41  ;;  %1116 = vadd.xlane.f32.xlu0 %v1115_v47  ;;  %v826_v51 = vmul.f32 %v3796_v46, %v4053_v54  ;;  %v1212_v54 = vld [vmem:[#allocation2 + $0x78] sm:$0xff]  ;;  %v1344_v41 = vld [vmem:[#allocation2 + $0xd0] sm:$0xff]  ;;  %v1346_v46 = vld [vmem:[#allocation2 + $0xe0] sm:$0xff] }
 0x7c5   :  { %v3800_v52 = vpop.eup %3799  ;;  %v636_v55 = vmul.f32 %v3798_v50, %v4032_v27  ;;  %3641 = vmatpush3.bf16.msra.mxu1 %v3638_v5  ;;  %v1213_v27 = vld [vmem:[#allocation2 + $0x80] sm:$0xff]  ;;  %v3650_v47 = vpack.c.bf16 %v1346_v46, %v1345_v44  ;;  %v1435_v50 = vld [vmem:[#allocation2 + $0x88] sm:$0xff]  ;;  %v1572_v46 = vld [vmem:[#allocation2 + $0xf8] sm:$0xff] }
 0x7c6   :  { %v3802_v56 = vpop.eup %3801  ;;  %v827_v57 = vmul.f32 %v3800_v52, %v4051_v53  ;;  %v3642_v7 = vpack.c.bf16 %v1213_v27, %v1212_v54  ;;  %v1437_v52 = vld [vmem:[#allocation2 + $0x98] sm:$0xff] }
 0x7c7   :  { %v637_v58 = vmul.f32 %v3802_v56, %v4030_v26  ;;  %v828_v59 = vadd.f32 %v826_v51, %v636_v55  ;;  %v1436_v51 = vld [vmem:[#allocation2 + $0x90] sm:$0xff]  ;;  %v1438_v56 = vld [vmem:[#allocation2 + $0xa0] sm:$0xff] }
 0x7c8   :  { %3643 = vmatprep.subr.bf16.mxu1 %v3642_v7  ;;  %v3654_v55 = vpack.c.bf16 %v1436_v51, %v1435_v50  ;;  %v1580_v51 = vld [vmem:[#allocation2 + $0x138] sm:$0xff] }
 0x7c9   :  { %v3804_v60 = vpop.eup %3803  ;;  %v829_v61 = vadd.f32 %v827_v57, %v637_v58  ;;  %3645 = vmatpush3.bf16.msra.mxu1 %v3642_v7  ;;  %v3658_v57 = vpack.c.bf16 %v1438_v56, %v1437_v52  ;;  %v1439_v58 = vld [vmem:[#allocation2 + $0xa8] sm:$0xff]  ;;  %v1581_v52 = vld [vmem:[#allocation2 + $0x140] sm:$0xff] }
 0x7ca   :  { %v3806_v62 = vpop.eup %3805  ;;  %v1017_v0 = vmul.f32 %v3804_v60, %v3381_v9  ;;  %3655 = vmatprep.subr.bf16.mxu1 %v3654_v55  ;;  %v3094_v7 = vld [vmem:[#allocation2 + $0xef] ss:$0 sm:$0xff] }
 0x7cb   :  { %v1016_v63 = vmul.f32 %v3806_v62, %v1005_v10  ;;  %v1574_v56 = vld [vmem:[#allocation2 + $0x108] sm:$0xff] }
 0x7cc   :  { %v1019_v1 = vadd.f32 %v1017_v0, %v829_v61 }
 0x7cd   :  { %v1018_v2 = vadd.f32 %v1016_v63, %v828_v59  ;;  %v1440_v59 = vld [vmem:[#allocation2 + $0xb0] sm:$0xff] }
 0x7ce   :  { %v3662_v60 = vpack.c.bf16 %v1440_v59, %v1439_v58  ;;  %v1582_v58 = vld [vmem:[#allocation2 + $0x148] sm:$0xff] }
 0x850   :  { %v1120_v53 = vpop.xlane.xlu1 %1119 }
 0x851   :  { %v1117_v26 = vpop.xlane.xlu0 %1116  ;;  %3807 = vrcp.f32 %v1120_v53 }
 0x852   :  { %3809 = vrcp.f32 %v1117_v26 }
 0x85b   :  { %v3808_v11 = vpop.eup %3807 }
 0x85c   :  { %v3810_v9 = vpop.eup %3809 }
 0x897   :  { %v3395_v12 = vpop.f32.mrb[8].mxu1 }
 0x898   :  { %v1207_v10 = vmul.f32 %v3808_v11, %v3395_v12  ;;  %v1195_v13 = vpop.f32.mrb[9].mxu1 }
 0x899   :  { %v1206_v37 = vmul.f32 %v3810_v9, %v1195_v13  ;;  %v1441_v9 = vld [vmem:[#allocation2 + $0xb8] sm:$0xff] }
 0x89a   :  { %v1209_v14 = vadd.f32 %v1207_v10, %v1019_v1  ;;  %v1442_v10 = vld [vmem:[#allocation2 + $0xc0] sm:$0xff] }
 0x89b   :  { %v1208_v40 = vadd.f32 %v1206_v37, %v1018_v2  ;;  %v3666_v13 = vpack.c.bf16 %v1442_v10, %v1441_v9  ;;  %v3095_v37 = vld [vmem:[#allocation2 + $0xec] ss:$0 sm:$0xff] }
 0x89d   :  { %3404 = vmatprep.mubr.msk.f32.mxu1 %vm203_vm2, %v1208_v40 }
 0x89e   :  { %3405 = vmatmul.mubr.msk.f32.vlgmr.msra.gmra.mrb[10].mxu1 %vm203_vm2, %v1209_v14 }
 0x89f   :  { %3657 = vmatpush3.bf16.msra.mxu1 %v3654_v55  ;;  %v3686_v55 = vpack.c.bf16 %v1581_v52, %v1580_v51 }
 0x8a0   :  { %3659 = vmatprep.subr.bf16.mxu1 %v3658_v57 }
 0x8a3   :  { %3661 = vmatpush3.bf16.msra.mxu1 %v3658_v57  ;;  %v1575_v57 = vld [vmem:[#allocation2 + $0x110] sm:$0xff] }
 0x8a4   :  { %3663 = vmatprep.subr.bf16.mxu1 %v3662_v60  ;;  %v3674_v59 = vpack.c.bf16 %v1575_v57, %v1574_v56 }
 0x8a7   :  { %3665 = vmatpush3.bf16.msra.mxu1 %v3662_v60  ;;  %v1583_v60 = vld [vmem:[#allocation2 + $0x150] sm:$0xff] }
 0x8a8   :  { %3667 = vmatprep.subr.bf16.mxu1 %v3666_v13 }
 0x8ab   :  { %3669 = vmatpush3.bf16.msra.mxu1 %v3666_v13  ;;  %v1578_v13 = vld [vmem:[#allocation2 + $0x128] sm:$0xff] }
 0x8ac   :  { %3687 = vmatprep.subr.bf16.mxu1 %v3686_v55 }
 0x971   :  { %v3406_v42 = vpop.f32.mrb[10].mxu1 }
 0x972   :  { %v1297_v16 = vadd.f32 %v3406_v42, %v3090_v15  ;;  %v1291_v17 = vpop.f32.mrb[11].mxu1 }
 0x973   :  { %v1292_v18 = vadd.f32 %v3090_v15, %v1291_v17 }
 0x974   :  { %v1303_v19 = vadd.f32 %v1297_v16, %v3926_v24 }
 0x975   :  { %v1302_v22 = vadd.f32 %v1292_v18, %v3924_v23  ;;  %v1343_v23 = vld [vmem:[#allocation2 + $0xc8] sm:$0xff] }
 0x976   :  { %v1307_v25 = vsel %vm203_vm2, %v1303_v19, 0.0  ;;  %v3646_v43 = vpack.c.bf16 %v1344_v41, %v1343_v23  ;;  %v3098_v18 = vld [vmem:[#allocation2 + $0xed] ss:$0 sm:$0xff] }
 0x977   :  { %1308 = vadd.xlane.f32.xlu1 %v1307_v25  ;;  %v1304_v28 = vsel %vm203_vm2, %v1302_v22, 0.0 }
 0x978   :  { %1305 = vadd.xlane.f32.xlu0 %v1304_v28  ;;  %3647 = vmatprep.subr.bf16.mxu0 %v3646_v43 }
 0x979   :  { %3649 = vmatpush3.bf16.msra.mxu0 %v3646_v43 }
 0x97a   :  { %3651 = vmatprep.subr.bf16.mxu0 %v3650_v47 }
 0x97d   :  { %3653 = vmatpush3.bf16.msra.mxu0 %v3650_v47  ;;  %v1573_v47 = vld [vmem:[#allocation2 + $0x100] sm:$0xff] }
 0x97e   :  { %v3670_v50 = vpack.c.bf16 %v1573_v47, %v1572_v46 }
 0x980   :  { %3671 = vmatprep.subr.bf16.mxu0 %v3670_v50 }
 0xa04   :  { %v1309_v29 = vpop.xlane.xlu1 %1308 }
 0xa05   :  { %v1312_v30 = vmul.f32 0.03125, %v1309_v29  ;;  %v1306_v20 = vpop.xlane.xlu0 %1305 }
 0xa06   :  { %v1311_v31 = vmul.f32 0.03125, %v1306_v20 }
 0xa07   :  { %v1314_v34 = vsub.f32 %v1303_v19, %v1312_v30 }
 0xa08   :  { %v1313_v21 = vsub.f32 %v1302_v22, %v1311_v31 }
 0xa09   :  { %v1316_v35 = vmul.f32 %v1314_v34, %v1314_v34 }
 0xa0a   :  { %v1315_v36 = vmul.f32 %v1313_v21, %v1313_v21 }
 0xa0b   :  { %v1320_v38 = vsel %vm203_vm2, %v1316_v35, 0.0 }
 0xa0c   :  { %1321 = vadd.xlane.f32.xlu1 %v1320_v38  ;;  %v1317_v24 = vsel %vm203_vm2, %v1315_v36, 0.0 }
 0xa0d   :  { %1318 = vadd.xlane.f32.xlu0 %v1317_v24 }
 0xa99   :  { %v1322_v61 = vpop.xlane.xlu1 %1321 }
 0xa9a   :  { %v1324_v62 = vmul.f32 0.03125, %v1322_v61  ;;  %v1319_v0 = vpop.xlane.xlu0 %1318  ;;  %v3690_v61 = vpack.c.bf16 %v1583_v60, %v1582_v58 }
 0xa9b   :  { %v1323_v63 = vmul.f32 0.03125, %v1319_v0  ;;  %v1577_v0 = vld [vmem:[#allocation2 + $0x120] sm:$0xff] }
 0xa9c   :  { %v1326_v1 = vadd.f32 1e-05, %v1324_v62  ;;  %v1576_v62 = vld [vmem:[#allocation2 + $0x118] sm:$0xff] }
 0xa9d   :  { %v1325_v2 = vadd.f32 1e-05, %v1323_v63  ;;  %v3678_v63 = vpack.c.bf16 %v1577_v0, %v1576_v62 }
 0xa9e   :  { %3811 = vrsqrt.f32 %v1326_v1 }
 0xa9f   :  { %3813 = vrsqrt.f32 %v1325_v2 }
 0xaa8   :  { %v3812_v3 = vpop.eup %3811 }
 0xaa9   :  { %v3814_v5 = vpop.eup %3813  ;;  %v1330_v54 = vmul.f32 %v3812_v3, %v1314_v34 }
 0xaaa   :  { %v1329_v27 = vmul.f32 %v3814_v5, %v1313_v21 }
 0xaab   :  { %v1336_v53 = vmul.f32 %v3093_v4, %v1330_v54 }
 0xaac   :  { %v1335_v26 = vmul.f32 %v3093_v4, %v1329_v27 }
 0xaad   :  { %v1342_v12 = vadd.f32 %v3094_v7, %v1336_v53 }
 0xaae   :  { %v1341_v11 = vadd.f32 %v3094_v7, %v1335_v26  ;;  %v3101_v7 = vld [vmem:[#allocation2 + $0xf0] ss:$0 sm:$0xff] }
 0xab0   :  { %3415 = vmatprep.mubr.msk.f32.mxu0 %vm203_vm2, %v1341_v11 }
 0xab1   :  { %3416 = vmatmul.mubr.msk.f32.vlgmr.msra.gmra.mrb[14].mxu0 %vm203_vm2, %v1342_v12 }
 0xab2   :  { %3673 = vmatpush3.bf16.msra.mxu0 %v3670_v50 }
 0xab3   :  { %3675 = vmatprep.subr.bf16.mxu0 %v3674_v59 }
 0xab6   :  { %3677 = vmatpush3.bf16.msra.mxu0 %v3674_v59 }
 0xab7   :  { %3679 = vmatprep.subr.bf16.mxu0 %v3678_v63 }
 0xb84   :  { %v3417_v14 = vpop.f32.mrb[14].mxu0 }
 0xb85   :  { %v1430_v40 = vadd.f32 %v3417_v14, %v3095_v37  ;;  %v1424_v15 = vpop.f32.mrb[15].mxu0 }
 0xb86   :  { %v1425_v42 = vadd.f32 %v3095_v37, %v1424_v15  ;;  %v1579_v37 = vld [vmem:[#allocation2 + $0x130] sm:$0xff] }
 0xb87   :  { %v1434_v17 = vmax.f32 %v1430_v40, 0.0  ;;  %v3682_v15 = vpack.c.bf16 %v1579_v37, %v1578_v13 }
 0xb88   :  { %v1433_v16 = vmax.f32 %v1425_v42, 0.0  ;;  %v3109_v42 = vld [vmem:[#allocation2 + $0x1da] ss:$0 sm:$0xff] }
 0xb8a   :  { %3434 = vmatprep.mubr.msk.f32.mxu1 %vm1448_vm1, %v1433_v16  ;;  %v3103_v16 = vld [vmem:[#allocation2 + $0x1d8] ss:$0 sm:$0xff] }
 0xb8b   :  { %3435 = vmatmul.mubr.msk.f32.vlgmr.msra.gmra.mrb[12].mxu1 %vm1448_vm1, %v1434_v17 }
 0xb8c   :  { %3689 = vmatpush3.bf16.msra.mxu1 %v3686_v55 }
 0xb8d   :  { %3691 = vmatprep.subr.bf16.mxu1 %v3690_v61 }
 0xb90   :  { %3693 = vmatpush3.bf16.msra.mxu1 %v3690_v61 }
 0xc5e   :  { %v3436_v19 = vpop.f32.mrb[12].mxu1 }
 0xc5f   :  { %v1527_v22 = vadd.f32 %v3436_v19, %v3098_v18  ;;  %v1521_v25 = vpop.f32.mrb[13].mxu1 }
 0xc60   :  { %v1522_v28 = vadd.f32 %v3098_v18, %v1521_v25 }
 0xc61   :  { %v1533_v29 = vadd.f32 %v1527_v22, %v1342_v12  ;;  %v3102_v12 = vld [vmem:[#allocation2 + $0xf1] ss:$0 sm:$0xff] }
 0xc62   :  { %v1532_v30 = vadd.f32 %v1522_v28, %v1341_v11 }
 0xc63   :  { %v1537_v20 = vsel %vm203_vm2, %v1533_v29, 0.0 }
 0xc64   :  { %1538 = vadd.xlane.f32.xlu1 %v1537_v20  ;;  %v1534_v31 = vsel %vm203_vm2, %v1532_v30, 0.0 }
 0xc65   :  { %1535 = vadd.xlane.f32.xlu0 %v1534_v31 }
 0xcf1   :  { %v1539_v34 = vpop.xlane.xlu1 %1538 }
 0xcf2   :  { %v1541_v21 = vmul.f32 0.03125, %v1539_v34  ;;  %v1536_v35 = vpop.xlane.xlu0 %1535 }
 0xcf3   :  { %v1540_v36 = vmul.f32 0.03125, %v1536_v35 }
 0xcf4   :  { %v1543_v38 = vsub.f32 %v1533_v29, %v1541_v21 }
 0xcf5   :  { %v1542_v24 = vsub.f32 %v1532_v30, %v1540_v36 }
 0xcf6   :  { %v1545_v23 = vmul.f32 %v1543_v38, %v1543_v38 }
 0xcf7   :  { %v1544_v41 = vmul.f32 %v1542_v24, %v1542_v24 }
 0xcf8   :  { %v1549_v43 = vsel %vm203_vm2, %v1545_v23, 0.0 }
 0xcf9   :  { %1550 = vadd.xlane.f32.xlu1 %v1549_v43  ;;  %v1546_v44 = vsel %vm203_vm2, %v1544_v41, 0.0 }
 0xcfa   :  { %1547 = vadd.xlane.f32.xlu0 %v1546_v44 }
 0xd86   :  { %v1551_v1 = vpop.xlane.xlu1 %1550 }
 0xd87   :  { %v1553_v2 = vmul.f32 0.03125, %v1551_v1  ;;  %v1548_v3 = vpop.xlane.xlu0 %1547 }
 0xd88   :  { %v1552_v4 = vmul.f32 0.03125, %v1548_v3 }
 0xd89   :  { %v1555_v5 = vadd.f32 1e-05, %v1553_v2 }
 0xd8a   :  { %v1554_v54 = vadd.f32 1e-05, %v1552_v4 }
 0xd8b   :  { %3815 = vrsqrt.f32 %v1555_v5 }
 0xd8c   :  { %3817 = vrsqrt.f32 %v1554_v54 }
 0xd95   :  { %v3816_v27 = vpop.eup %3815 }
 0xd96   :  { %v3818_v53 = vpop.eup %3817  ;;  %v1559_v26 = vmul.f32 %v3816_v27, %v1543_v38  ;;  %v3106_v38 = vld [vmem:[#allocation2 + $0x1d9] ss:$0 sm:$0xff] }
 0xd97   :  { %v1558_v11 = vmul.f32 %v3818_v53, %v1542_v24 }
 0xd98   :  { %v1565_v9 = vmul.f32 %v3101_v7, %v1559_v26 }
 0xd99   :  { %v1564_v10 = vmul.f32 %v3101_v7, %v1558_v11 }
 0xd9a   :  { %v4108_v40 = vadd.f32 %v3102_v12, %v1565_v9 }
 0xd9b   :  { %v4106_v14 = vadd.f32 %v3102_v12, %v1564_v10 }
 0xd9d   :  { %3445 = vmatprep.mubr.msk.f32.mxu0 %vm203_vm2, %v4106_v14  ;;  %3467 = vmatprep.mubr.msk.f32.mxu1 %vm203_vm2, %v4106_v14 }
 0xd9e   :  { %3446 = vmatmul.mubr.msk.f32.vlgmr.msra.gmra.mrb[16].mxu0 %vm203_vm2, %v4108_v40  ;;  %3468 = vmatmul.mubr.msk.f32.vlgmr.msra.gmra.mrb[14].mxu1 %vm203_vm2, %v4108_v40 }
 0xd9f   :  { %3681 = vmatpush3.bf16.msra.mxu0 %v3678_v63  ;;  %3456 = vmatprep.mubr.msk.f32.mxu0 %vm203_vm2, %v4106_v14 }
 0xda0   :  { %3683 = vmatprep.subr.bf16.mxu0 %v3682_v15 }
 0xda3   :  { %3685 = vmatpush3.bf16.msra.mxu0 %v3682_v15 }
 0xda6   :  { %3457 = vmatmul.mubr.msk.f32.vlgmr.msra.gmra.mrb[18].mxu0 %vm203_vm2, %v4108_v40 }
 0xe71   :  { %v3447_v17 = vpop.f32.mrb[16].mxu0  ;;  %v3469_v18 = vpop.f32.mrb[14].mxu1 }
 0xe72   :  { %v1827_v19 = vadd.f32 %v3469_v18, %v3109_v42  ;;  %v1663_v22 = vpop.f32.mrb[17].mxu0  ;;  %v1821_v25 = vpop.f32.mrb[15].mxu1  ;;  %v4145_v56 = vadd.f32 %v3447_v17, %v3103_v16 }
 0xe73   :  { %v4122_v28 = vadd.f32 %v3103_v16, %v1663_v22  ;;  %v1822_v29 = vadd.f32 %v3109_v42, %v1821_v25 }
 0xe74   :  { %v1938_v31 = vmul.f32 %v3944_v33, %v1827_v19  ;;  %v2128_v21 = vmul.f32 %v3974_v45, %v1827_v19  ;;  %v2318_v36 = vmul.f32 %v3977_v48, %v1827_v19  ;;  %v2508_v41 = vmul.f32 %v3980_v49, %v1827_v19 }
 0xe75   :  { %v1830_v30 = vmul.f32 %v3944_v33, %v4122_v28  ;;  %v1937_v20 = vmul.f32 %v3944_v33, %v1822_v29  ;;  %v2127_v34 = vmul.f32 %v3974_v45, %v1822_v29  ;;  %v2317_v35 = vmul.f32 %v3977_v48, %v1822_v29 }
 0xe76   :  { %v2507_v23 = vmul.f32 %v3980_v49, %v1822_v29  ;;  %v1831_v57 = vmul.f32 %v3944_v33, %v4145_v56  ;;  %v2026_v58 = vmul.f32 %v3974_v45, %v4122_v28  ;;  %v2027_v59 = vmul.f32 %v3974_v45, %v4145_v56 }
 0xe77   :  { %3474 = vmatprep.mubr.msk.f32.mxu0 %vm203_vm2, %v1830_v30  ;;  %v3700_v24 = vpack.c.bf16 %v1938_v31, %v1937_v20  ;;  %v3710_v43 = vpack.c.bf16 %v2128_v21, %v2127_v34  ;;  %v3720_v44 = vpack.c.bf16 %v2318_v36, %v2317_v35  ;;  %v2216_v19 = vmul.f32 %v3977_v48, %v4122_v28 }
 0xe78   :  { %v4135_v47 = vpack.c.bf16 %v2508_v41, %v2507_v23  ;;  %v2217_v22 = vmul.f32 %v3977_v48, %v4145_v56 }
 0xe79   :  { %v3458_v46 = vpop.f32.mrb[18].mxu0  ;;  %3701 = vmatprep.subr.bf16.mxu1 %v3700_v24 }
 0xe7a   :  { %v1748_v50 = vadd.f32 %v3458_v46, %v3106_v38  ;;  %v1742_v51 = vpop.f32.mrb[19].mxu0  ;;  %3703 = vmatpush3.bf16.msra.mxu1 %v3700_v24 }
 0xe7b   :  { %v1743_v52 = vadd.f32 %v3106_v38, %v1742_v51  ;;  %3711 = vmatprep.subr.bf16.mxu1 %v3710_v43  ;;  %v2407_v51 = vmul.f32 %v3980_v49, %v4145_v56 }
 0xe7d   :  { %v4137_v55 = vpack.c.bf16 %v1748_v50, %v1743_v52  ;;  %v2406_v50 = vmul.f32 %v3980_v49, %v4122_v28 }
 0xe7f   :  { %3696 = vmatprep.subr.msk.bf16.mxu0 %vm3954_vm8, %v4137_v55 }
 0xe80   :  { %3699 = vmatpush3.bf16.xpose.msk.msra.mxu0 %vm3954_vm8, %v4137_v55 }
 0xe81   :  { %3706 = vmatprep.subr.msk.bf16.mxu0 %vm3954_vm8, %v4137_v55 }
 0xe87   :  { %3475 = vmatmul.mubr.msk.f32.vlgmr.msra.gmra.mrb[20].mxu0 %vm203_vm2, %v1831_v57 }
 0xe88   :  { %3709 = vmatpush3.bf16.xpose.msk.msra.mxu0 %vm3954_vm8, %v4137_v55  ;;  %3488 = vmatprep.mubr.msk.f32.mxu0 %vm203_vm2, %v2026_v58 }
 0xe89   :  { %3721 = vmatprep.subr.bf16.mxu0 %v3720_v44 }
 0xe8f   :  { %3489 = vmatmul.mubr.msk.f32.vlgmr.msra.gmra.mrb[22].mxu0 %vm203_vm2, %v2027_v59 }
 0xe90   :  { %3723 = vmatpush3.bf16.msra.mxu0 %v3720_v44 }
 0xe91   :  { %3726 = vmatprep.subr.msk.bf16.mxu0 %vm3954_vm8, %v4137_v55 }
 0xf5a   :  { %v3476_v33 = vpop.f32.mrb[20].mxu0 }
 0xf5b   :  { %v1916_v60 = vadd.f32 %v3476_v33, %v4004_v8  ;;  %v1910_v61 = vpop.f32.mrb[21].mxu0 }
 0xf5c   :  { %v1911_v62 = vadd.f32 %v1910_v61, %v4002_v6 }
 0xf5d   :  { %v1922_v0 = vsel %vm532_vm0, %v1916_v60, -inf }
 0xf5e   :  { %1923 = vmax.xlane.f32.xlu1 %v1922_v0  ;;  %v1919_v63 = vsel %vm532_vm0, %v1911_v62, -inf }
 0xf5f   :  { %1920 = vmax.xlane.f32.xlu0 %v1919_v63 }
 0xf62   :  { %v3490_v45 = vpop.f32.mrb[22].mxu0 }
 0xf63   :  { %v2106_v1 = vadd.f32 %v3490_v45, %v4004_v8  ;;  %v2100_v2 = vpop.f32.mrb[23].mxu0 }
 0xf64   :  { %v2101_v3 = vadd.f32 %v2100_v2, %v4002_v6 }
 0xf65   :  { %v2112_v4 = vsel %vm532_vm0, %v2106_v1, -inf }
 0xf66   :  { %2113 = vmax.xlane.f32.xlu1 %v2112_v4  ;;  %v2109_v5 = vsel %vm532_vm0, %v2101_v3, -inf }
 0xf67   :  { %2110 = vmax.xlane.f32.xlu0 %v2109_v5 }
 0xfeb   :  { %v1924_v54 = vpop.xlane.xlu1 %1923 }
 0xfec   :  { %v1926_v27 = vsub.f32 %v1916_v60, %v1924_v54  ;;  %v1921_v7 = vpop.xlane.xlu0 %1920 }
 0xfed   :  { %v1925_v53 = vsub.f32 %v1911_v62, %v1921_v7 }
 0xfee   :  { %v1929_v26 = vmul.f32 1.442695, %v1926_v27 }
 0xfef   :  { %v1927_v11 = vmul.f32 1.442695, %v1925_v53 }
 0xff1   :  { %3819 = vpow2.f32 %v1927_v11 }
 0xff2   :  { %3821 = vpow2.f32 %v1929_v26 }
 0xff3   :  { %v2114_v12 = vpop.xlane.xlu1 %2113 }
 0xff4   :  { %v2116_v9 = vsub.f32 %v2106_v1, %v2114_v12  ;;  %v2111_v10 = vpop.xlane.xlu0 %2110 }
 0xff5   :  { %v2115_v13 = vsub.f32 %v2101_v3, %v2111_v10 }
 0xff6   :  { %v2119_v37 = vmul.f32 1.442695, %v2116_v9 }
 0xff7   :  { %v2117_v15 = vmul.f32 1.442695, %v2115_v13 }
 0xff9   :  { %3823 = vpow2.f32 %v2117_v15 }
 0xffa   :  { %3825 = vpow2.f32 %v2119_v37 }
 0xffb   :  { %v3820_v42 = vpop.eup %3819 }
 0xffc   :  { %v3822_v16 = vpop.eup %3821  ;;  %3481 = vmatprep.mubr.msk.f32.mxu1 %vm532_vm0, %v3820_v42  ;;  %v1931_v49 = vsel %vm532_vm0, %v3820_v42, 0.0 }
 0xffd   :  { %3482 = vmatmul.mubr.msk.f32.vlgmr.msra.gmra.mrb[16].mxu1 %vm532_vm0, %v3822_v16 }
 0xffe   :  { %3713 = vmatpush3.bf16.msra.mxu1 %v3710_v43 }
 0xfff   :  { %3716 = vmatprep.subr.msk.bf16.mxu1 %vm3954_vm8, %v4137_v55 }
0x1003   :  { %v3824_v17 = vpop.eup %3823 }
0x1004   :  { %v3826_v18 = vpop.eup %3825  ;;  %3495 = vmatprep.mubr.msk.f32.mxu1 %vm532_vm0, %v3824_v17  ;;  %v2121_v61 = vsel %vm532_vm0, %v3824_v17, 0.0 }
0x1005   :  { %3496 = vmatmul.mubr.msk.f32.vlgmr.msra.gmra.mrb[18].mxu1 %vm532_vm0, %v3826_v18  ;;  %v2124_v56 = vsel %vm532_vm0, %v3826_v18, 0.0 }
0x1006   :  { %3502 = vmatprep.mubr.msk.f32.mxu1 %vm203_vm2, %v2216_v19 }
0x1007   :  { %3719 = vmatpush3.bf16.xpose.msk.msra.mxu1 %vm3954_vm8, %v4137_v55 }
0x1008   :  { %3731 = vmatprep.subr.bf16.mxu1 %v4135_v47 }
0x100e   :  { %3503 = vmatmul.mubr.msk.f32.vlgmr.msra.gmra.mrb[20].mxu1 %vm203_vm2, %v2217_v22 }
0x100f   :  { %3733 = vmatpush3.bf16.msra.mxu1 %v4135_v47 }
0x10d0   :  { %v4191_v25 = vpop.f32.mrb[16].mxu1 }
0x10d1   :  { %v4193_v29 = vpop.f32.mrb[17].mxu1 }
0x10d8   :  { %v4195_v30 = vpop.f32.mrb[18].mxu1 }
0x10d9   :  { %v4197_v20 = vpop.f32.mrb[19].mxu1 }
0x10e1   :  { %v3504_v31 = vpop.f32.mrb[20].mxu1 }
0x10e2   :  { %v2296_v34 = vadd.f32 %v3504_v31, %v4004_v8  ;;  %v2290_v21 = vpop.f32.mrb[21].mxu1 }
0x10e3   :  { %v2291_v35 = vadd.f32 %v2290_v21, %v4002_v6 }
0x10e4   :  { %v2302_v48 = vsel %vm532_vm0, %v2296_v34, -inf }
0x10e5   :  { %2303 = vmax.xlane.f32.xlu1 %v2302_v48  ;;  %v2299_v36 = vsel %vm532_vm0, %v2291_v35, -inf }
0x10e6   :  { %2300 = vmax.xlane.f32.xlu0 %v2299_v36 }
0x1172   :  { %v2304_v38 = vpop.xlane.xlu1 %2303 }
0x1173   :  { %v2306_v24 = vsub.f32 %v2296_v34, %v2304_v38  ;;  %v2301_v23 = vpop.xlane.xlu0 %2300  ;;  %v2596_v38 = vld [vmem:[#allocation2 + $0x158] sm:$0xff] }
0x1174   :  { %v2305_v41 = vsub.f32 %v2291_v35, %v2301_v23 }
0x1175   :  { %v2309_v43 = vmul.f32 1.442695, %v2306_v24  ;;  %v2597_v24 = vld [vmem:[#allocation2 + $0x160] sm:$0xff] }
0x1176   :  { %v2307_v44 = vmul.f32 1.442695, %v2305_v41  ;;  %v3734_v23 = vpack.c.bf16 %v2597_v24, %v2596_v38 }
0x1178   :  { %3827 = vpow2.f32 %v2307_v44  ;;  %3735 = vmatprep.subr.bf16.mxu1 %v3734_v23 }
0x1179   :  { %3829 = vpow2.f32 %v2309_v43 }
0x1182   :  { %v3828_v46 = vpop.eup %3827 }
0x1183   :  { %v3830_v47 = vpop.eup %3829  ;;  %3509 = vmatprep.mubr.msk.f32.mxu0 %vm532_vm0, %v3828_v46  ;;  %v2311_v62 = vsel %vm532_vm0, %v3828_v46, 0.0 }
0x1184   :  { %3510 = vmatmul.mubr.msk.f32.vlgmr.msra.gmra.mrb[24].mxu0 %vm532_vm0, %v3830_v47 }
0x1185   :  { %3729 = vmatpush3.bf16.xpose.msk.msra.mxu0 %vm3954_vm8, %v4137_v55  ;;  %3516 = vmatprep.mubr.msk.f32.mxu0 %vm203_vm2, %v2406_v50 }
0x118c   :  { %3517 = vmatmul.mubr.msk.f32.vlgmr.msra.gmra.mrb[26].mxu0 %vm203_vm2, %v2407_v51 }
0x1257   :  { %v3511_v52 = vpop.f32.mrb[24].mxu0 }
0x1258   :  { %v2391_v57 = vpop.f32.mrb[25].mxu0 }
0x125f   :  { %v3518_v58 = vpop.f32.mrb[26].mxu0 }
0x1260   :  { %v2486_v59 = vadd.f32 %v3518_v58, %v4004_v8  ;;  %v2480_v33 = vpop.f32.mrb[27].mxu0  ;;  %v1934_v8 = vsel %vm532_vm0, %v3822_v16, 0.0  ;;  %v3136_v58 = vld [vmem:[#allocation2 + $0x1db] ss:$0 sm:$0xff] }
0x1261   :  { %v2481_v28 = vadd.f32 %v2480_v33, %v4002_v6  ;;  %v2314_v6 = vsel %vm532_vm0, %v3830_v47, 0.0 }
0x1262   :  { %v2492_v60 = vsel %vm532_vm0, %v2486_v59, -inf }
0x1263   :  { %2493 = vmax.xlane.f32.xlu1 %v2492_v60  ;;  %v2489_v55 = vsel %vm532_vm0, %v2481_v28, -inf }
0x1264   :  { %2490 = vmax.xlane.f32.xlu0 %v2489_v55 }
0x1267   :  { %2122 = vadd.xlane.f32.xlu1 %v2121_v61 }
0x1268   :  { %1932 = vadd.xlane.f32.xlu0 %v1931_v49 }
0x126b   :  { %2125 = vadd.xlane.f32.xlu1 %v2124_v56 }
0x126c   :  { %1935 = vadd.xlane.f32.xlu0 %v1934_v8 }
0x126f   :  { %2315 = vadd.xlane.f32.xlu1 %v2314_v6 }
0x1270   :  { %2312 = vadd.xlane.f32.xlu0 %v2311_v62 }
0x12f0   :  { %v2494_v0 = vpop.xlane.xlu1 %2493 }
0x12f1   :  { %v2496_v63 = vsub.f32 %v2486_v59, %v2494_v0  ;;  %v2491_v45 = vpop.xlane.xlu0 %2490 }
0x12f2   :  { %v2495_v1 = vsub.f32 %v2481_v28, %v2491_v45 }
0x12f3   :  { %v2499_v2 = vmul.f32 1.442695, %v2496_v63 }
0x12f4   :  { %v2497_v3 = vmul.f32 1.442695, %v2495_v1  ;;  %v2123_v4 = vpop.xlane.xlu1 %2122 }
0x12f5   :  { %3831 = vpow2.f32 %v2499_v2  ;;  %v1933_v5 = vpop.xlane.xlu0 %1932 }
0x12f6   :  { %3833 = vpow2.f32 %v2497_v3 }
0x12f7   :  { %3835 = vrcp.f32 %v2123_v4  ;;  %v2729_v4 = vld [vmem:[#allocation2 + $0x1c0] sm:$0xff] }
0x12f8   :  { %3837 = vrcp.f32 %v1933_v5  ;;  %v2126_v54 = vpop.xlane.xlu1 %2125 }
0x12f9   :  { %3839 = vrcp.f32 %v2126_v54  ;;  %v1936_v27 = vpop.xlane.xlu0 %1935  ;;  %v2730_v54 = vld [vmem:[#allocation2 + $0x1c8] sm:$0xff] }
0x12fa   :  { %3841 = vrcp.f32 %v1936_v27  ;;  %v2731_v27 = vld [vmem:[#allocation2 + $0x1d0] sm:$0xff] }
0x12fc   :  { %v2316_v7 = vpop.xlane.xlu1 %2315 }
0x12fd   :  { %3843 = vrcp.f32 %v2316_v7  ;;  %v2313_v53 = vpop.xlane.xlu0 %2312  ;;  %v3746_v7 = vpack.c.bf16 %v2731_v27, %v2730_v54 }
0x12fe   :  { %3845 = vrcp.f32 %v2313_v53  ;;  %v2820_v53 = vld [vmem:[#allocation2 + $0x178] sm:$0xff] }
0x12ff   :  { %v3832_v26 = vpop.eup %3831 }
0x1300   :  { %v3834_v11 = vpop.eup %3833  ;;  %v2504_v12 = vsel %vm532_vm0, %v3832_v26, 0.0 }
0x1301   :  { %v3836_v9 = vpop.eup %3835  ;;  %3523 = vmatprep.mubr.msk.f32.mxu1 %vm532_vm0, %v3834_v11  ;;  %2505 = vadd.xlane.f32.xlu1 %v2504_v12  ;;  %v2501_v10 = vsel %vm532_vm0, %v3834_v11, 0.0  ;;  %v2822_v11 = vld [vmem:[#allocation2 + $0x188] sm:$0xff] }
0x1302   :  { %v3838_v13 = vpop.eup %3837  ;;  %3524 = vmatmul.mubr.msk.f32.vlgmr.msra.gmra.mrb[22].mxu1 %vm532_vm0, %v3832_v26  ;;  %2502 = vadd.xlane.f32.xlu0 %v2501_v10  ;;  %v2212_v37 = vmul.f32 %v3836_v9, %v4197_v20  ;;  %v2598_v20 = vld [vmem:[#allocation2 + $0x168] sm:$0xff]  ;;  %v2821_v26 = vld [vmem:[#allocation2 + $0x180] sm:$0xff]  ;;  %v2823_v9 = vld [vmem:[#allocation2 + $0x190] sm:$0xff] }
0x1303   :  { %v3840_v15 = vpop.eup %3839  ;;  %v2022_v42 = vmul.f32 %v3838_v13, %v4193_v29  ;;  %3737 = vmatpush3.bf16.msra.mxu1 %v3734_v23  ;;  %v2599_v29 = vld [vmem:[#allocation2 + $0x170] sm:$0xff]  ;;  %v3750_v12 = vpack.c.bf16 %v2821_v26, %v2820_v53  ;;  %v3754_v10 = vpack.c.bf16 %v2823_v9, %v2822_v11  ;;  %v2824_v13 = vld [vmem:[#allocation2 + $0x198] sm:$0xff]  ;;  %v3147_v11 = vld [vmem:[#allocation2 + $0x1e0] ss:$0 sm:$0xff] }
0x1304   :  { %v3842_v16 = vpop.eup %3841  ;;  %v2213_v17 = vmul.f32 %v3840_v15, %v4195_v30  ;;  %v3738_v41 = vpack.c.bf16 %v2599_v29, %v2598_v20  ;;  %v2826_v29 = vld [vmem:[#allocation2 + $0x1a8] sm:$0xff] }
0x1305   :  { %v2023_v18 = vmul.f32 %v3842_v16, %v4191_v25  ;;  %v2214_v19 = vadd.f32 %v2212_v37, %v2022_v42  ;;  %v2825_v37 = vld [vmem:[#allocation2 + $0x1a0] sm:$0xff] }
0x1306   :  { %3739 = vmatprep.subr.bf16.mxu1 %v3738_v41  ;;  %v3758_v15 = vpack.c.bf16 %v2825_v37, %v2824_v13  ;;  %v3148_v13 = vld [vmem:[#allocation2 + $0x1e1] ss:$0 sm:$0xff] }
0x1307   :  { %v3844_v22 = vpop.eup %3843  ;;  %v2215_v31 = vadd.f32 %v2213_v17, %v2023_v18  ;;  %3741 = vmatpush3.bf16.msra.mxu1 %v3738_v41  ;;  %v2827_v41 = vld [vmem:[#allocation2 + $0x1b0] sm:$0xff] }
0x1308   :  { %v3846_v34 = vpop.eup %3845  ;;  %v2403_v21 = vmul.f32 %v3844_v22, %v3511_v52  ;;  %3751 = vmatprep.subr.bf16.mxu1 %v3750_v12 }
0x1309   :  { %v2402_v35 = vmul.f32 %v3846_v34, %v2391_v57  ;;  %v3139_v34 = vld [vmem:[#allocation2 + $0x1de] ss:$0 sm:$0xff] }
0x130a   :  { %v2405_v48 = vadd.f32 %v2403_v21, %v2215_v31 }
0x130b   :  { %v2404_v36 = vadd.f32 %v2402_v35, %v2214_v19 }
0x138e   :  { %v2506_v30 = vpop.xlane.xlu1 %2505 }
0x138f   :  { %v2503_v25 = vpop.xlane.xlu0 %2502  ;;  %3847 = vrcp.f32 %v2506_v30  ;;  %v3762_v30 = vpack.c.bf16 %v2827_v41, %v2826_v29 }
0x1390   :  { %3849 = vrcp.f32 %v2503_v25  ;;  %v3141_v25 = vld [vmem:[#allocation2 + $0x1dc] ss:$0 sm:$0xff] }
0x1399   :  { %v3848_v43 = vpop.eup %3847 }
0x139a   :  { %v3850_v46 = vpop.eup %3849 }
0x13d5   :  { %v3525_v44 = vpop.f32.mrb[22].mxu1 }
0x13d6   :  { %v2593_v47 = vmul.f32 %v3848_v43, %v3525_v44  ;;  %v2581_v50 = vpop.f32.mrb[23].mxu1 }
0x13d7   :  { %v2592_v51 = vmul.f32 %v3850_v46, %v2581_v50 }
0x13d8   :  { %v2595_v52 = vadd.f32 %v2593_v47, %v2405_v48 }
0x13d9   :  { %v2594_v57 = vadd.f32 %v2592_v51, %v2404_v36  ;;  %v3140_v36 = vld [vmem:[#allocation2 + $0x1df] ss:$0 sm:$0xff] }
0x13db   :  { %3534 = vmatprep.mubr.msk.f32.mxu1 %vm203_vm2, %v2594_v57 }
0x13dc   :  { %3535 = vmatmul.mubr.msk.f32.vlgmr.msra.gmra.mrb[24].mxu1 %vm203_vm2, %v2595_v52  ;;  %v3144_v52 = vld [vmem:[#allocation2 + $0x1dd] ss:$0 sm:$0xff] }
0x13dd   :  { %3753 = vmatpush3.bf16.msra.mxu1 %v3750_v12 }
0x13de   :  { %3755 = vmatprep.subr.bf16.mxu1 %v3754_v10 }
0x13e1   :  { %3757 = vmatpush3.bf16.msra.mxu1 %v3754_v10 }
0x13e2   :  { %3759 = vmatprep.subr.bf16.mxu1 %v3758_v15 }
0x13e5   :  { %3761 = vmatpush3.bf16.msra.mxu1 %v3758_v15 }
0x13e6   :  { %3763 = vmatprep.subr.bf16.mxu1 %v3762_v30 }
0x13e9   :  { %3765 = vmatpush3.bf16.msra.mxu1 %v3762_v30 }
0x14af   :  { %v3536_v59 = vpop.f32.mrb[24].mxu1 }
0x14b0   :  { %v2683_v33 = vadd.f32 %v3536_v59, %v3136_v58  ;;  %v2677_v28 = vpop.f32.mrb[25].mxu1 }
0x14b1   :  { %v2678_v60 = vadd.f32 %v3136_v58, %v2677_v28 }
0x14b2   :  { %v2689_v55 = vadd.f32 %v2683_v33, %v4108_v40 }
0x14b3   :  { %v2688_v61 = vadd.f32 %v2678_v60, %v4106_v14  ;;  %v2728_v14 = vld [vmem:[#allocation2 + $0x1b8] sm:$0xff] }
0x14b4   :  { %v2693_v49 = vsel %vm203_vm2, %v2689_v55, 0.0  ;;  %v3742_v5 = vpack.c.bf16 %v2729_v4, %v2728_v14  ;;  %v3890_v14 = vmov 0  }
0x14b5   :  { %2694 = vadd.xlane.f32.xlu1 %v2693_v49  ;;  %v2690_v56 = vsel %vm203_vm2, %v2688_v61, 0.0  ;;  %3778 = vset.pattern.permute.xlu0 %v3890_v14 }
0x14b6   :  { %2691 = vadd.xlane.f32.xlu0 %v2690_v56  ;;  %3743 = vmatprep.subr.bf16.mxu0 %v3742_v5 }
0x14b7   :  { %3745 = vmatpush3.bf16.msra.mxu0 %v3742_v5 }
0x14b8   :  { %3747 = vmatprep.subr.bf16.mxu0 %v3746_v7 }
0x14bb   :  { %3749 = vmatpush3.bf16.msra.mxu0 %v3746_v7 }
0x1542   :  { %v2695_v8 = vpop.xlane.xlu1 %2694 }
0x1543   :  { %v2697_v6 = vmul.f32 0.03125, %v2695_v8  ;;  %v2692_v62 = vpop.xlane.xlu0 %2691 }
0x1544   :  { %v2696_v0 = vmul.f32 0.03125, %v2692_v62 }
0x1545   :  { %v2699_v63 = vsub.f32 %v2689_v55, %v2697_v6 }
0x1546   :  { %v2698_v45 = vsub.f32 %v2688_v61, %v2696_v0 }
0x1547   :  { %v2701_v1 = vmul.f32 %v2699_v63, %v2699_v63 }
0x1548   :  { %v2700_v2 = vmul.f32 %v2698_v45, %v2698_v45 }
0x1549   :  { %v2705_v3 = vsel %vm203_vm2, %v2701_v1, 0.0 }
0x154a   :  { %2706 = vadd.xlane.f32.xlu1 %v2705_v3  ;;  %v2702_v40 = vsel %vm203_vm2, %v2700_v2, 0.0  ;;  %v3888_v3 = vmov 0.0|0.0  }
0x154b   :  { %2703 = vadd.xlane.f32.xlu0 %v2702_v40  ;;  %3766 = vmatprep.subr.bf16.mxu0 %v3888_v3  ;;  %v2957_v40 = vld [vmem:[#allocation2 + $0x6] sm:$0x1] }
0x15d7   :  { %v2707_v42 = vpop.xlane.xlu1 %2706 }
0x15d8   :  { %v2709_v16 = vmul.f32 0.03125, %v2707_v42  ;;  %v2704_v17 = vpop.xlane.xlu0 %2703 }
0x15d9   :  { %v2708_v18 = vmul.f32 0.03125, %v2704_v17  ;;  %v2956_v17 = vld [vmem:[#allocation2 + $0x5] sm:$0x1] }
0x15da   :  { %v2711_v19 = vadd.f32 1e-05, %v2709_v16 }
0x15db   :  { %v2710_v22 = vadd.f32 1e-05, %v2708_v18 }
0x15dc   :  { %3851 = vrsqrt.f32 %v2711_v19 }
0x15dd   :  { %3853 = vrsqrt.f32 %v2710_v22 }
0x15e6   :  { %v3852_v31 = vpop.eup %3851 }
0x15e7   :  { %v3854_v21 = vpop.eup %3853  ;;  %v2715_v35 = vmul.f32 %v3852_v31, %v2699_v63 }
0x15e8   :  { %v2714_v48 = vmul.f32 %v3854_v21, %v2698_v45 }
0x15e9   :  { %v2721_v38 = vmul.f32 %v3139_v34, %v2715_v35 }
0x15ea   :  { %v2720_v24 = vmul.f32 %v3139_v34, %v2714_v48 }
0x15eb   :  { %v2727_v20 = vadd.f32 %v3140_v36, %v2721_v38 }
0x15ec   :  { %v2726_v23 = vadd.f32 %v3140_v36, %v2720_v24 }
0x15ee   :  { %3545 = vmatprep.mubr.msk.f32.mxu0 %vm203_vm2, %v2726_v23 }
0x15ef   :  { %3546 = vmatmul.mubr.msk.f32.vlgmr.msra.gmra.mrb[28].mxu0 %vm203_vm2, %v2727_v20 }
0x15f0   :  { %3571 = vmatprep.mubr.msk.f32.mxu0 %vm3889_vm3, %v3886_v32 }
0x16c2   :  { %v3547_v43 = vpop.f32.mrb[28].mxu0 }
0x16c3   :  { %v2815_v44 = vadd.f32 %v3547_v43, %v3141_v25  ;;  %v2809_v46 = vpop.f32.mrb[29].mxu0 }
0x16c4   :  { %v2810_v47 = vadd.f32 %v3141_v25, %v2809_v46 }
0x16c5   :  { %v2819_v51 = vmax.f32 %v2815_v44, 0.0 }
0x16c6   :  { %v2818_v50 = vmax.f32 %v2810_v47, 0.0 }
0x16c8   :  { %3564 = vmatprep.mubr.msk.f32.mxu1 %vm1448_vm1, %v2818_v50 }
0x16c9   :  { %3565 = vmatmul.mubr.msk.f32.vlgmr.msra.gmra.mrb[26].mxu1 %vm1448_vm1, %v2819_v51 }
0x179c   :  { %v3566_v57 = vpop.f32.mrb[26].mxu1 }
0x179d   :  { %v2911_v58 = vadd.f32 %v3566_v57, %v3144_v52  ;;  %v2905_v59 = vpop.f32.mrb[27].mxu1 }
0x179e   :  { %v2906_v33 = vadd.f32 %v3144_v52, %v2905_v59 }
0x179f   :  { %v2917_v28 = vadd.f32 %v2911_v58, %v2727_v20 }
0x17a0   :  { %v2916_v60 = vadd.f32 %v2906_v33, %v2726_v23 }
0x17a1   :  { %v2921_v55 = vsel %vm203_vm2, %v2917_v28, 0.0 }
0x17a2   :  { %2922 = vadd.xlane.f32.xlu1 %v2921_v55  ;;  %v2918_v61 = vsel %vm203_vm2, %v2916_v60, 0.0 }
0x17a3   :  { %2919 = vadd.xlane.f32.xlu0 %v2918_v61 }
0x182f   :  { %v2923_v49 = vpop.xlane.xlu1 %2922 }
0x1830   :  { %v2925_v56 = vmul.f32 0.03125, %v2923_v49  ;;  %v2920_v8 = vpop.xlane.xlu0 %2919 }
0x1831   :  { %v2924_v6 = vmul.f32 0.03125, %v2920_v8 }
0x1832   :  { %v2927_v62 = vsub.f32 %v2917_v28, %v2925_v56 }
0x1833   :  { %v2926_v0 = vsub.f32 %v2916_v60, %v2924_v6 }
0x1834   :  { %v2929_v63 = vmul.f32 %v2927_v62, %v2927_v62 }
0x1835   :  { %v2928_v45 = vmul.f32 %v2926_v0, %v2926_v0 }
0x1836   :  { %v2933_v1 = vsel %vm203_vm2, %v2929_v63, 0.0 }
0x1837   :  { %2934 = vadd.xlane.f32.xlu1 %v2933_v1  ;;  %v2930_v2 = vsel %vm203_vm2, %v2928_v45, 0.0 }
0x1838   :  { %2931 = vadd.xlane.f32.xlu0 %v2930_v2 }
0x184e   :  { %2960 = vperm.xlu0 %3778, %v2957_v40  }
0x18c4   :  { %v2935_v4 = vpop.xlane.xlu1 %2934 }
0x18c5   :  { %v2937_v5 = vmul.f32 0.03125, %v2935_v4  ;;  %v2932_v54 = vpop.xlane.xlu0 %2931 }
0x18c6   :  { %v2936_v27 = vmul.f32 0.03125, %v2932_v54 }
0x18c7   :  { %v2939_v7 = vadd.f32 1e-05, %v2937_v5 }
0x18c8   :  { %v2938_v53 = vadd.f32 1e-05, %v2936_v27 }
0x18c9   :  { %3855 = vrsqrt.f32 %v2939_v7 }
0x18ca   :  { %3857 = vrsqrt.f32 %v2938_v53 }
0x18cd   :  { %v2961_v18 = vpop.permute.xlu0 %2960 }
0x18d3   :  { %v3856_v26 = vpop.eup %3855 }
0x18d4   :  { %v3858_v12 = vpop.eup %3857  ;;  %v2943_v9 = vmul.f32 %v3856_v26, %v2927_v62 }
0x18d5   :  { %v2942_v10 = vmul.f32 %v3858_v12, %v2926_v0 }
0x18d6   :  { %v2949_v37 = vmul.f32 %v3147_v11, %v2943_v9 }
0x18d7   :  { %v2948_v32 = vmul.f32 %v3147_v11, %v2942_v10 }
0x18d8   :  { %v2955_v15 = vadd.f32 %v3148_v13, %v2949_v37 }
0x18d9   :  { %v2954_v42 = vadd.f32 %v3148_v13, %v2948_v32 }
0x18db   :  { %v3767_v16 = vpack.c.bf16 %v2955_v15, %v2954_v42 }
0x18dd   :  { %3769 = vmatpush3.bf16.xpose.msk.msra.mxu0 %vm3954_vm8, %v3767_v16 }
0x18e4   :  { %3572 = vmatmul.mubr.msk.f32.vlgmr.msra.gmra.mrb[30].mxu0 %vm203_vm2, %v2956_v17 }
0x19b7   :  { %v3038_v19 = vpop.f32.mrb[30].mxu0 }
0x19b8   :  { %v3039_v22 = vadd.f32 %v3038_v19, %v2961_v18  ;;  %v3573_v31 = vpop.f32.mrb[31].mxu0 }
0x19ba   :  { %3043 = vst.msk [vmem:[%s4257_s2] sm:$0x1] %vm3042_vm4, %v3039_v22 }
0x19bb   :  { %3048 = vsyncpa [#allocation3], 1 }

</bundles_post_ra>
